<compile_context>
chip_gen: v7x
topology: tpu7x:2x2x1
jax: 0.10.0
libtpu: 0.0.40
codegen_flags: <defaults>
</compile_context>

<pallas_src>
import functools

import jax
import jax.numpy as jnp
from jax.experimental import pallas as pl
from jax.experimental.pallas import tpu as pltpu


# ------------------------------ tiling config --------------------------------

_ROW_TILE = 256        # token-row tile (sublane axis).  Kept == _SEQ_TILE so a
_SEQ_TILE = 256        # single up-front sequence pad aligns every kernel.
_COL_TILE = 512        # output-feature (lane) tile
_INNER_TILE = 512      # GLU hidden (reduction) tile
# NOTE: on v5e/v6e (128 MiB VMEM) _ROW_TILE could be raised to 512 for the FF
# kernel to halve FF weight re-streaming; the values above also fit v7x.


def _round_up(n, m):
    return ((n + m - 1) // m) * m


def _vmem_limit_bytes():
    # ~5/8 of physical VMEM, capped at 96 MiB: ~40 MiB on v7x (64 MiB/TC),
    # ~80 MiB on v5e/v6e (128 MiB).  Falls back to a v7x-safe value.
    try:
        cap = int(pltpu.get_tpu_info().vmem_capacity_bytes)
    except Exception:
        cap = 64 * 1024 * 1024
    return int(min(cap * 5 // 8, 96 * 1024 * 1024))


_VMEM_LIMIT = _vmem_limit_bytes()


def _cparams(dimension_semantics):
    return pltpu.CompilerParams(dimension_semantics=dimension_semantics,
                                vmem_limit_bytes=_VMEM_LIMIT)


def _lane_tile(n, preferred=_COL_TILE):
    """Tile for a last (lane) axis: full extent, or a 128-multiple dividing n."""
    if n <= preferred:
        return n
    t = preferred
    while t >= 128:
        if n % t == 0:
            return t
        t -= 128
    return n


def _row_plan(rows):
    """(tile, padded_rows) for the token-row axis (padding is a rare fallback)."""
    if rows <= _ROW_TILE:
        return rows, rows
    if rows % _ROW_TILE == 0:
        return _ROW_TILE, rows
    return _ROW_TILE, _round_up(rows, _ROW_TILE)


def _pad_rows(x, rows_pad):
    if x.shape[0] == rows_pad:
        return x
    return jnp.pad(x, ((0, rows_pad - x.shape[0]), (0, 0)))


def _rmsnorm(x, g):
    # x-transformers RMSNorm: F.normalize(x, dim=-1) * sqrt(dim) * g
    ss = jnp.sum(x * x, axis=-1, keepdims=True)
    inv = jax.lax.rsqrt(jnp.maximum(ss, 1e-24)) * jnp.sqrt(jnp.float32(x.shape[-1]))
    return x * inv * g


# ----------------------------- Pallas kernels --------------------------------

def _matmul_bias_kernel(x_ref, w_ref, b_ref, o_ref):
    # out = x @ w + b (bf16 MXU inputs, f32 accumulate/bias)
    o_ref[...] = (jnp.dot(x_ref[...], w_ref[...],
                          preferred_element_type=jnp.float32) + b_ref[...])


def _norm_qkv_rope_kernel(x_ref, g_ref, wq_ref, wk_ref, wv_ref,
                          ropeq_ref, ropek_ref, q_ref, k_ref, v_ref):
    """Fused RMSNorm -> QKV projections -> interleaved rotary on q/k.

    Rotary pair rotation (x0,x1)->(x0*c - x1*s, x1*c + x0*s) is computed as
        out = x*cos + roll(x,-1)*sina + roll(x,+1)*sinb
    with sina = -sin on even lanes (0 elsewhere) and sinb = +sin on odd lanes;
    the attention scale 1/sqrt(dh) is folded into the q table.
    """
    hd = q_ref.shape[-1]
    h = _rmsnorm(x_ref[...], g_ref[...]).astype(jnp.bfloat16)

    def rope(t, tab):
        cos, sina, sinb = tab[:, :hd], tab[:, hd:2 * hd], tab[:, 2 * hd:]
        nxt = pltpu.roll(t, hd - 1, 1)    # t[..., i+1]  (wrap hits a zero coeff)
        prv = pltpu.roll(t, 1, 1)         # t[..., i-1]  (wrap hits a zero coeff)
        return t * cos + nxt * sina + prv * sinb

    q = jnp.dot(h, wq_ref[...], preferred_element_type=jnp.float32)
    k = jnp.dot(h, wk_ref[...], preferred_element_type=jnp.float32)
    v = jnp.dot(h, wv_ref[...], preferred_element_type=jnp.float32)
    q_ref[...] = rope(q, ropeq_ref[...]).astype(q_ref.dtype)
    k_ref[...] = rope(k, ropek_ref[...]).astype(k_ref.dtype)
    v_ref[...] = v.astype(v_ref.dtype)


def _linear_residual_kernel(a_ref, w_ref, r_ref, o_ref):
    # attention output projection fused with the residual add.
    o_ref[...] = r_ref[...] + jnp.dot(a_ref[...], w_ref[...],
                                      preferred_element_type=jnp.float32)


def _ff_glu_kernel(x_ref, g_ref, w1a_ref, w1g_ref, w2_ref, o_ref, h_sc, acc_sc):
    # fused: RMSNorm -> GLU feedforward -> down proj -> residual add.
    # GLU hidden axis is the inner grid axis, accumulated into VMEM scratch.
    j = pl.program_id(1)

    @pl.when(j == 0)
    def _init():
        h_sc[...] = _rmsnorm(x_ref[...], g_ref[...]).astype(jnp.bfloat16)
        acc_sc[...] = jnp.zeros_like(acc_sc)

    h = h_sc[...]
    val = jnp.dot(h, w1a_ref[...], preferred_element_type=jnp.float32)
    gate = jnp.dot(h, w1g_ref[...], preferred_element_type=jnp.float32)
    y = (val * jax.nn.gelu(gate, approximate=True)).astype(jnp.bfloat16)
    acc_sc[...] += jnp.dot(y, w2_ref[...], preferred_element_type=jnp.float32)

    @pl.when(j == pl.num_programs(1) - 1)
    def _finalize():
        o_ref[...] = acc_sc[...] + x_ref[...]        # residual add epilogue


def _flash_attn_kernel(q_ref, k_ref, v_ref, o_ref, m_sc, l_sc, acc_sc,
                       *, heads, dh):
    # flash-style causal attention over a [N, H*Dh] tile; q is pre-scaled and
    # pre-roped.  acc / l scratch are lane-dense (tq, H*Dh) so the finalize is a
    # single dense store.
    qi = pl.program_id(1)
    kv = pl.program_id(2)
    n_kv = pl.num_programs(2)
    tq = q_ref.shape[0]
    tkv = k_ref.shape[0]

    @pl.when(kv == 0)
    def _init():
        m_sc[...] = jnp.full_like(m_sc, -1e30)
        l_sc[...] = jnp.zeros_like(l_sc)
        acc_sc[...] = jnp.zeros_like(acc_sc)

    def process(masked):
        q = q_ref[...]                    # bf16 (tq, H*dh)
        k = k_ref[...]
        v = v_ref[...]
        if masked:
            # diagonal block: q_start == kv_start, so local indices suffice.
            causal = (jax.lax.broadcasted_iota(jnp.int32, (tq, tkv), 1)
                      <= jax.lax.broadcasted_iota(jnp.int32, (tq, tkv), 0))
        for h in range(heads):            # static unroll over heads
            sl = slice(h * dh, (h + 1) * dh)
            s = jax.lax.dot_general(q[:, sl], k[:, sl], (((1,), (1,)), ((), ())),
                                    preferred_element_type=jnp.float32)
            if masked:
                s = jnp.where(causal, s, -1e30)
            m_prev = m_sc[h]                                   # (tq, 1)
            m_new = jnp.maximum(m_prev, jnp.max(s, axis=-1, keepdims=True))
            alpha = jnp.exp(m_prev - m_new)
            # TODO(synk): on v6e/v7x compute exp in bf16 (bf16 EUP) for ~2x.
            p = jnp.exp(s - m_new)
            l_sc[:, sl] = alpha * l_sc[:, sl] + jnp.sum(p, axis=-1, keepdims=True)
            acc_sc[:, sl] = alpha * acc_sc[:, sl] + jnp.dot(
                p.astype(jnp.bfloat16), v[:, sl],
                preferred_element_type=jnp.float32)
            m_sc[h] = m_new

    @pl.when(kv < qi)                     # fully below the diagonal: no masking
    def _interior():
        process(masked=False)

    @pl.when(kv == qi)                    # diagonal block: causal mask needed
    def _diagonal():
        process(masked=True)

    @pl.when(kv == n_kv - 1)
    def _finalize():
        o_ref[...] = (acc_sc[...] *
                      pl.reciprocal(l_sc[...], approx=True)).astype(o_ref.dtype)


def _norm_latent_cdist_kernel(x_ref, g_ref, w_ref, b_ref, ct_ref, cn_ref, o_ref,
                              tok_sc, tokn_sc):
    # fused: final RMSNorm -> model_to_latent -> logits = -cdist(tok, codebook),
    # codebook axis tiled (inner grid axis); norm+projection hoisted to j == 0.
    j = pl.program_id(1)

    @pl.when(j == 0)
    def _init():
        h = _rmsnorm(x_ref[...], g_ref[...]).astype(jnp.bfloat16)
        tok = jnp.dot(h, w_ref[...], preferred_element_type=jnp.float32) + b_ref[...]
        tok_sc[...] = tok.astype(jnp.bfloat16)
        tokn_sc[...] = jnp.sum(tok * tok, axis=-1, keepdims=True)

    cross = jnp.dot(tok_sc[...], ct_ref[...], preferred_element_type=jnp.float32)
    d2 = tokn_sc[...] - 2.0 * cross + cn_ref[...]
    o_ref[...] = -jnp.sqrt(jnp.maximum(d2, 0.0))


# ----------------------------- kernel wrappers --------------------------------

def pallas_linear_bias(x, w, b):
    """x @ w + b (used once per forward to fold latent_to_model into the codebook)."""
    m, k = x.shape
    n = w.shape[1]
    tm, mp = _row_plan(m)
    tn = _lane_tile(n)
    xp = _pad_rows(x, mp)
    out = pl.pallas_call(
        _matmul_bias_kernel,
        grid=(mp // tm, n // tn),
        in_specs=[pl.BlockSpec((tm, k), lambda i, j: (i, 0)),
                  pl.BlockSpec((k, tn), lambda i, j: (0, j)),
                  pl.BlockSpec((1, tn), lambda i, j: (0, j))],
        out_specs=pl.BlockSpec((tm, tn), lambda i, j: (i, j)),
        out_shape=jax.ShapeDtypeStruct((mp, n), jnp.float32),
        compiler_params=_cparams(("parallel", "parallel")),
    )(xp, w, b.reshape(1, n))
    return out[:m]


def fused_rmsnorm_qkv_rope(x, g, wq, wk, wv, rope_q, rope_k):
    """RMSNorm -> QKV -> rotary(q, k) (+ q pre-scale), fused; x is [B, N, dim]."""
    b, n, d = x.shape
    hd = wq.shape[1]
    tn = n if n <= _SEQ_TILE else _SEQ_TILE
    assert n % tn == 0
    tok_spec = pl.BlockSpec((None, tn, d), lambda bi, ni: (bi, ni, 0))
    out_spec = pl.BlockSpec((None, tn, hd), lambda bi, ni: (bi, ni, 0))
    tab_spec = pl.BlockSpec((tn, 3 * hd), lambda bi, ni: (ni, 0))
    w_spec = pl.BlockSpec((d, hd), lambda bi, ni: (0, 0))
    out_sds = jax.ShapeDtypeStruct((b, n, hd), jnp.bfloat16)
    return pl.pallas_call(
        _norm_qkv_rope_kernel,
        grid=(b, n // tn),
        in_specs=[tok_spec,
                  pl.BlockSpec((1, d), lambda bi, ni: (0, 0)),
                  w_spec, w_spec, w_spec, tab_spec, tab_spec],
        out_specs=(out_spec, out_spec, out_spec),
        out_shape=(out_sds, out_sds, out_sds),
        compiler_params=_cparams(("parallel", "parallel")),
    )(x, g.reshape(1, d), wq, wk, wv, rope_q, rope_k)


def flash_causal_attention(q, k, v, heads, dim_head):
    """Flash causal attention over [B, N, H*Dh] bf16 tensors (no head transposes)."""
    b, n, hd = q.shape
    tq = n if n <= _SEQ_TILE else _SEQ_TILE
    assert n % tq == 0
    tkv = tq
    kernel = functools.partial(_flash_attn_kernel, heads=heads, dh=dim_head)
    qspec = pl.BlockSpec((None, tq, hd), lambda bi, qi, kv: (bi, qi, 0))
    # Clamp the K/V block index to the causal diagonal: above-diagonal blocks
    # map to an already-resident block and are never DMA'd (compute is skipped).
    kvspec = pl.BlockSpec((None, tkv, hd),
                          lambda bi, qi, kv: (bi, jnp.minimum(kv, qi), 0))
    return pl.pallas_call(
        kernel,
        grid=(b, n // tq, n // tkv),
        in_specs=[qspec, kvspec, kvspec],
        out_specs=qspec,
        out_shape=jax.ShapeDtypeStruct((b, n, hd), jnp.bfloat16),
        scratch_shapes=[pltpu.VMEM((heads, tq, 1), jnp.float32),   # running max
                        pltpu.VMEM((tq, hd), jnp.float32),         # softmax denom
                        pltpu.VMEM((tq, hd), jnp.float32)],        # output acc
        compiler_params=_cparams(("parallel", "parallel", "arbitrary")),
    )(q, k, v)


def fused_linear_residual(a, w, res):
    """res + a @ w  (attention out projection + residual add)."""
    m, k = a.shape
    n = w.shape[1]
    tm, mp = _row_plan(m)
    tn = _lane_tile(n)
    ap = _pad_rows(a, mp)
    rp = _pad_rows(res, mp)
    out = pl.pallas_call(
        _linear_residual_kernel,
        grid=(mp // tm, n // tn),
        in_specs=[pl.BlockSpec((tm, k), lambda i, j: (i, 0)),
                  pl.BlockSpec((k, tn), lambda i, j: (0, j)),
                  pl.BlockSpec((tm, tn), lambda i, j: (i, j))],
        out_specs=pl.BlockSpec((tm, tn), lambda i, j: (i, j)),
        out_shape=jax.ShapeDtypeStruct((mp, n), jnp.float32),
        compiler_params=_cparams(("parallel", "parallel")),
    )(ap, w, rp)
    return out[:m]


def fused_rmsnorm_glu_ff(x, g, w1a, w1g, w2):
    """x + FF(RMSNorm(x; g)) with GLU, tiled over the GLU hidden axis."""
    m, d = x.shape
    inner = w1a.shape[1]
    tm, mp = _row_plan(m)
    ti = _lane_tile(inner, _INNER_TILE)
    xp = _pad_rows(x, mp)
    out = pl.pallas_call(
        _ff_glu_kernel,
        grid=(mp // tm, inner // ti),
        in_specs=[pl.BlockSpec((tm, d), lambda i, j: (i, 0)),
                  pl.BlockSpec((1, d), lambda i, j: (0, 0)),
                  pl.BlockSpec((d, ti), lambda i, j: (0, j)),
                  pl.BlockSpec((d, ti), lambda i, j: (0, j)),
                  pl.BlockSpec((ti, d), lambda i, j: (j, 0))],
        out_specs=pl.BlockSpec((tm, d), lambda i, j: (i, 0)),
        out_shape=jax.ShapeDtypeStruct((mp, d), jnp.float32),
        scratch_shapes=[pltpu.VMEM((tm, d), jnp.bfloat16),
                        pltpu.VMEM((tm, d), jnp.float32)],
        compiler_params=_cparams(("parallel", "arbitrary")),
    )(xp, g.reshape(1, d), w1a, w1g, w2)
    return out[:m]


def fused_norm_latent_logits(x, g, w_ml, b_ml, codebook_t, codebook_sqnorm):
    """-cdist(RMSNorm(x; g) @ w_ml + b_ml, codebook), codebook axis tiled."""
    m, d = x.shape
    dl, c = codebook_t.shape
    tm, mp = _row_plan(m)
    tc = _lane_tile(c)
    xp = _pad_rows(x, mp)
    out = pl.pallas_call(
        _norm_latent_cdist_kernel,
        grid=(mp // tm, c // tc),
        in_specs=[pl.BlockSpec((tm, d), lambda i, j: (i, 0)),
                  pl.BlockSpec((1, d), lambda i, j: (0, 0)),
                  pl.BlockSpec((d, dl), lambda i, j: (0, 0)),
                  pl.BlockSpec((1, dl), lambda i, j: (0, 0)),
                  pl.BlockSpec((dl, tc), lambda i, j: (0, j)),
                  pl.BlockSpec((1, tc), lambda i, j: (0, j))],
        out_specs=pl.BlockSpec((tm, tc), lambda i, j: (i, j)),
        out_shape=jax.ShapeDtypeStruct((mp, c), jnp.float32),
        scratch_shapes=[pltpu.VMEM((tm, dl), jnp.bfloat16),
                        pltpu.VMEM((tm, 1), jnp.float32)],
        compiler_params=_cparams(("parallel", "arbitrary")),
    )(xp, g.reshape(1, d), w_ml, b_ml.reshape(1, dl), codebook_t, codebook_sqnorm)
    return out[:m]


# ------------------------------ params & forward ------------------------------

def init_params(key, cfg):
    def nxt():
        nonlocal key
        key, sub = jax.random.split(key)
        return sub

    dim = cfg["dim"]
    dl = cfg["dim_latent"]
    inner = dim * cfg["ff_mult"]
    hd = cfg["heads"] * cfg["dim_head"]

    def w(shape, scale=0.05):
        # weights stored in bf16 at init: no per-forward astype / padding.
        return (jax.random.normal(nxt(), shape, jnp.float32) * scale).astype(jnp.bfloat16)

    codebook = jax.random.normal(nxt(), (cfg["codebook_size"], dl), jnp.float32) * 0.5
    params = {
        # codebook stored once in the forms the kernels consume
        "codebook_bf16": codebook.astype(jnp.bfloat16),              # [C, dl]
        "codebook_t": codebook.T.astype(jnp.bfloat16),               # [dl, C]
        "codebook_sqnorm": jnp.sum(codebook * codebook, axis=-1,
                                   keepdims=True).T,                 # [1, C] f32
        "latent_to_model_w": w((dl, dim)),
        "latent_to_model_b": jnp.zeros((dim,), jnp.float32),
        "model_to_latent_w": w((dim, dl)),
        "model_to_latent_b": jnp.zeros((dl,), jnp.float32),
        # nn.Parameter(torch.zeros(num_meta_tokens, dim)) in MetaTokenWrapper
        "meta_tokens": jnp.zeros((cfg["num_meta_tokens"], dim), jnp.float32),
        "final_norm_g": jnp.ones((dim,), jnp.float32),
        "layers": [],
    }
    for _ in range(cfg["depth"]):
        params["layers"].append({
            "attn_norm_g": jnp.ones((dim,), jnp.float32),
            "wq": w((dim, hd)), "wk": w((dim, hd)), "wv": w((dim, hd)),
            "wo": w((hd, dim)),
            "ff_norm_g": jnp.ones((dim,), jnp.float32),
            "ff_w1a": w((dim, inner)), "ff_w1g": w((dim, inner)),
            "ff_w2": w((inner, dim)),
        })
    return params


def genie2_forward(params, state_codes, time_seq_len, cfg):
    b, latent_seq_len = state_codes.shape
    dim = cfg["dim"]
    heads = cfg["heads"]
    dh = cfg["dim_head"]
    hd = heads * dh
    nmt = cfg["num_meta_tokens"]

    assert latent_seq_len % time_seq_len == 0
    spatial_repeat = latent_seq_len // time_seq_len

    # latent_to_model folded into the codebook once per forward, then a gather.
    code_embed = pallas_linear_bias(params["codebook_bf16"],
                                    params["latent_to_model_w"],
                                    params["latent_to_model_b"])      # [C, dim] f32
    x_tokens = jnp.take(code_embed, state_codes, axis=0)              # [B, L, dim]

    # MetaTokenWrapper: prepend learned meta tokens.
    meta = jnp.broadcast_to(params["meta_tokens"][None], (b, nmt, dim))
    x = jnp.concatenate([meta, x_tokens], axis=1)                     # f32 residual
    n_total = nmt + latent_seq_len

    # pad the residual stream ONCE (sequence axis) so every kernel tile aligns.
    if n_total > _SEQ_TILE or b * n_total > _ROW_TILE:
        n_pad = _round_up(n_total, _SEQ_TILE)
    else:
        n_pad = n_total
    if n_pad != n_total:
        x = jnp.pad(x, ((0, 0), (0, n_pad - n_total), (0, 0)))
    rows = b * n_pad

    # rotary tables (RotaryEmbedding(dim=dh//2), theta=1e4) built once per
    # forward, shared across layers; interleaved pairs expressed as
    # cos / sina(-sin @ even lanes) / sinb(+sin @ odd lanes); the 1/sqrt(dh)
    # attention scale is folded into the q table; meta tokens get position -1.
    positions = jnp.concatenate([
        jnp.full((nmt,), -1.0, jnp.float32),
        jnp.repeat(jnp.arange(time_seq_len, dtype=jnp.float32), spatial_repeat),
        jnp.zeros((n_pad - n_total,), jnp.float32)])
    rot_dim = dh // 2
    inv_freq = 1.0 / (10000.0 ** (jnp.arange(0, rot_dim, 2, dtype=jnp.float32)
                                  / rot_dim))
    freqs = positions[:, None] * inv_freq[None, :]
    angles = jnp.repeat(freqs, 2, axis=-1)                 # f0,f0,f1,f1,...
    angles = jnp.pad(angles, ((0, 0), (0, dh - rot_dim)))  # angle 0 == identity
    cos = jnp.cos(angles)
    sin = jnp.sin(angles)
    even = (jnp.arange(dh) % 2 == 0).astype(jnp.float32)[None, :]
    sina = -sin * even
    sinb = sin * (1.0 - even)
    tab = jnp.concatenate([jnp.tile(cos, (1, heads)),
                           jnp.tile(sina, (1, heads)),
                           jnp.tile(sinb, (1, heads))], axis=-1)       # [n_pad, 3*hd]
    rope_q = tab * (1.0 / (dh ** 0.5))
    rope_k = tab

    # causal transformer decoder (pre-RMSNorm, GLU FF)
    # TODO(synk): add_value_residual / learned_value_residual_mix /
    #             num_residual_streams=4 hyper-connections not reproduced.
    for layer in params["layers"]:
        q, k, v = fused_rmsnorm_qkv_rope(x, layer["attn_norm_g"],
                                         layer["wq"], layer["wk"], layer["wv"],
                                         rope_q, rope_k)               # bf16
        attn = flash_causal_attention(q, k, v, heads, dh)              # bf16
        xf = x.reshape(rows, dim)
        xf = fused_linear_residual(attn.reshape(rows, hd), layer["wo"], xf)
        xf = fused_rmsnorm_glu_ff(xf, layer["ff_norm_g"], layer["ff_w1a"],
                                  layer["ff_w1g"], layer["ff_w2"])
        x = xf.reshape(b, n_pad, dim)

    # MetaTokenWrapper unpack (strip meta + pad), then fused
    # final-norm -> model_to_latent -> logits = -cdist(tokens, codebook).
    embed = x[:, nmt:nmt + latent_seq_len]
    logits = fused_norm_latent_logits(embed.reshape(b * latent_seq_len, dim),
                                      params["final_norm_g"],
                                      params["model_to_latent_w"],
                                      params["model_to_latent_b"],
                                      params["codebook_t"],
                                      params["codebook_sqnorm"])
    return logits.reshape(b, latent_seq_len, cfg["codebook_size"])


# ----------------------------------- main -------------------------------------

if __name__ == "__main__":
    cfg = dict(
        dim=32,            # model dim
        dim_latent=16,     # VQ latent dim
        depth=2,           # transformer depth (module default 12, small here)
        heads=2,
        dim_head=16,
        num_meta_tokens=4,
        codebook_size=128,
        ff_mult=4,
    )
    key = jax.random.PRNGKey(0)
    pkey, ckey = jax.random.split(key)
    params = init_params(pkey, cfg)

    batch = 2
    time_seq_len = 2   # frames
    spatial = 4        # spatial tokens per frame
    state_codes = jax.random.randint(
        ckey, (batch, time_seq_len * spatial), 0, cfg["codebook_size"],
        dtype=jnp.int32)

    fwd = jax.jit(lambda p, c: genie2_forward(p, c, time_seq_len, cfg))
    logits = fwd(params, state_codes)
    jax.block_until_ready(logits)

    assert logits.shape == (batch, time_seq_len * spatial, cfg["codebook_size"])
    assert bool(jnp.all(jnp.isfinite(logits)))
    print("KERNEL_OK")
</pallas_src>

<mosaic_0001>
module attributes {stable_mosaic.version = 11 : i64} {
  func.func @_matmul_bias_kernel(%arg0: i32, %arg1: i32, %arg2: memref<128x16xbf16, #tpu.memory_space<vmem>>, %arg3: memref<16x32xbf16, #tpu.memory_space<vmem>>, %arg4: memref<1x32xf32, #tpu.memory_space<vmem>>, %arg5: memref<128x32xf32, #tpu.memory_space<vmem>>) attributes {dimension_semantics = [#tpu.dimension_semantics<parallel>, #tpu.dimension_semantics<parallel>], iteration_bounds = array<i64: 1, 1>, scalar_prefetch = 0 : i64, scratch_operands = 0 : i64, tpu.core_type = #tpu.core_type<tc>, window_params = [{transform_indices = @transform_0, window_bounds = array<i64: 128, 16>}, {transform_indices = @transform_1, window_bounds = array<i64: 16, 32>}, {transform_indices = @transform_2, window_bounds = array<i64: 1, 32>}, {transform_indices = @transform_3, window_bounds = array<i64: 128, 32>}]} {
    %c0 = arith.constant 0 : index
    %c0_0 = arith.constant 0 : index
    %0 = vector.load %arg2[%c0, %c0_0] : memref<128x16xbf16, #tpu.memory_space<vmem>>, vector<128x16xbf16>
    %c0_1 = arith.constant 0 : index
    %c0_2 = arith.constant 0 : index
    %1 = vector.load %arg3[%c0_1, %c0_2] : memref<16x32xbf16, #tpu.memory_space<vmem>>, vector<16x32xbf16>
    %cst = arith.constant dense<0.000000e+00> : vector<128x32xf32>
    %2 = tpu.matmul %0, %1, %cst {dimension_numbers = #tpu.dot_dimension_numbers<[1], [0], [0], [1], [0, 0, 1, 1], [], []>} : vector<128x16xbf16>, vector<16x32xbf16>, vector<128x32xf32> -> vector<128x32xf32>
    %c0_3 = arith.constant 0 : index
    %c0_4 = arith.constant 0 : index
    %3 = vector.load %arg4[%c0_3, %c0_4] : memref<1x32xf32, #tpu.memory_space<vmem>>, vector<1x32xf32>
    %4 = vector.broadcast %3 : vector<1x32xf32> to vector<128x32xf32>
    %5 = arith.addf %2, %4 : vector<128x32xf32>
    %c0_5 = arith.constant 0 : index
    %c0_6 = arith.constant 0 : index
    %6 = vector.load %arg5[%c0_5, %c0_6] : memref<128x32xf32, #tpu.memory_space<vmem>>, vector<128x32xf32>
    tpu.vector_store %arg5[%c0_5, %c0_6], %5 {strides = array<i32>} : memref<128x32xf32, #tpu.memory_space<vmem>>, vector<128x32xf32>,
    return
  }
  func.func @transform_0(%arg0: i32, %arg1: i32) -> (i32, i32) {
    %c0_i32 = arith.constant 0 : i32
    %c0_i32_0 = arith.constant 0 : i32
    return %arg0, %c0_i32 : i32, i32
  }
  func.func @transform_1(%arg0: i32, %arg1: i32) -> (i32, i32) {
    %c0_i32 = arith.constant 0 : i32
    %c0_i32_0 = arith.constant 0 : i32
    return %c0_i32, %arg1 : i32, i32
  }
  func.func @transform_2(%arg0: i32, %arg1: i32) -> (i32, i32) {
    %c0_i32 = arith.constant 0 : i32
    %c0_i32_0 = arith.constant 0 : i32
    return %c0_i32, %arg1 : i32, i32
  }
  func.func @transform_3(%arg0: i32, %arg1: i32) -> (i32, i32) {
    %c0_i32 = arith.constant 0 : i32
    return %arg0, %arg1 : i32, i32
  }
}

module attributes {stable_mosaic.version = 11 : i64} {
  func.func @_norm_qkv_rope_kernel(%arg0: i32, %arg1: i32, %arg2: memref<1x12x32xf32, #tpu.memory_space<vmem>>, %arg3: memref<1x32xf32, #tpu.memory_space<vmem>>, %arg4: memref<32x32xbf16, #tpu.memory_space<vmem>>, %arg5: memref<32x32xbf16, #tpu.memory_space<vmem>>, %arg6: memref<32x32xbf16, #tpu.memory_space<vmem>>, %arg7: memref<12x96xf32, #tpu.memory_space<vmem>>, %arg8: memref<12x96xf32, #tpu.memory_space<vmem>>, %arg9: memref<1x12x32xbf16, #tpu.memory_space<vmem>>, %arg10: memref<1x12x32xbf16, #tpu.memory_space<vmem>>, %arg11: memref<1x12x32xbf16, #tpu.memory_space<vmem>>) attributes {dimension_semantics = [#tpu.dimension_semantics<parallel>, #tpu.dimension_semantics<parallel>], iteration_bounds = array<i64: 2, 1>, scalar_prefetch = 0 : i64, scratch_operands = 0 : i64, tpu.core_type = #tpu.core_type<tc>, window_params = [{transform_indices = @transform_0, window_bounds = array<i64: 1, 12, 32>}, {pipeline_mode = #tpu.pipeline_mode<synchronous>, transform_indices = @transform_1, window_bounds = array<i64: 1, 32>}, {pipeline_mode = #tpu.pipeline_mode<synchronous>, transform_indices = @transform_2, window_bounds = array<i64: 32, 32>}, {pipeline_mode = #tpu.pipeline_mode<synchronous>, transform_indices = @transform_3, window_bounds = array<i64: 32, 32>}, {pipeline_mode = #tpu.pipeline_mode<synchronous>, transform_indices = @transform_4, window_bounds = array<i64: 32, 32>}, {transform_indices = @transform_5, window_bounds = array<i64: 12, 96>}, {transform_indices = @transform_6, window_bounds = array<i64: 12, 96>}, {transform_indices = @transform_7, window_bounds = array<i64: 1, 12, 32>}, {transform_indices = @transform_8, window_bounds = array<i64: 1, 12, 32>}, {transform_indices = @transform_9, window_bounds = array<i64: 1, 12, 32>}]} {
    %c0 = arith.constant 0 : index
    %c0_0 = arith.constant 0 : index
    %c0_1 = arith.constant 0 : index
    %0 = vector.load %arg2[%c0, %c0_0, %c0_1] : memref<1x12x32xf32, #tpu.memory_space<vmem>>, vector<1x12x32xf32>
    %1 = vector.shape_cast %0 : vector<1x12x32xf32> to vector<12x32xf32>
    %c0_2 = arith.constant 0 : index
    %c0_3 = arith.constant 0 : index
    %2 = vector.load %arg3[%c0_2, %c0_3] : memref<1x32xf32, #tpu.memory_space<vmem>>, vector<1x32xf32>
    %3 = arith.mulf %1, %1 : vector<12x32xf32>
    %cst = arith.constant dense<0.000000e+00> : vector<12xf32>
    %4 = vector.multi_reduction <add>, %3, %cst [1] : vector<12x32xf32> to vector<12xf32>
    %5 = vector.shape_cast %4 : vector<12xf32> to vector<12x1xf32>
    %cst_4 = arith.constant 1.000000e-24 : f32
    %6 = vector.broadcast %cst_4 : f32 to vector<12x1xf32>
    %7 = arith.maximumf %5, %6 : vector<12x1xf32>
    %8 = math.rsqrt %7 : vector<12x1xf32>
    %cst_5 = arith.constant 3.200000e+01 : f32
    %9 = math.sqrt %cst_5 : f32
    %10 = vector.broadcast %9 : f32 to vector<12x1xf32>
    %11 = arith.mulf %8, %10 : vector<12x1xf32>
    %12 = vector.broadcast %11 : vector<12x1xf32> to vector<12x32xf32>
    %13 = arith.mulf %1, %12 : vector<12x32xf32>
    %14 = vector.broadcast %2 : vector<1x32xf32> to vector<12x32xf32>
    %15 = arith.mulf %13, %14 : vector<12x32xf32>
    %16 = arith.truncf %15 : vector<12x32xf32> to vector<12x32xbf16>
    %c0_6 = arith.constant 0 : index
    %c0_7 = arith.constant 0 : index
    %17 = vector.load %arg4[%c0_6, %c0_7] : memref<32x32xbf16, #tpu.memory_space<vmem>>, vector<32x32xbf16>
    %cst_8 = arith.constant dense<0.000000e+00> : vector<12x32xf32>
    %18 = tpu.matmul %16, %17, %cst_8 {dimension_numbers = #tpu.dot_dimension_numbers<[1], [0], [0], [1], [0, 0, 1, 1], [], []>} : vector<12x32xbf16>, vector<32x32xbf16>, vector<12x32xf32> -> vector<12x32xf32>
    %c0_9 = arith.constant 0 : index
    %c0_10 = arith.constant 0 : index
    %19 = vector.load %arg5[%c0_9, %c0_10] : memref<32x32xbf16, #tpu.memory_space<vmem>>, vector<32x32xbf16>
    %cst_11 = arith.constant dense<0.000000e+00> : vector<12x32xf32>
    %20 = tpu.matmul %16, %19, %cst_11 {dimension_numbers = #tpu.dot_dimension_numbers<[1], [0], [0], [1], [0, 0, 1, 1], [], []>} : vector<12x32xbf16>, vector<32x32xbf16>, vector<12x32xf32> -> vector<12x32xf32>
    %c0_12 = arith.constant 0 : index
    %c0_13 = arith.constant 0 : index
    %21 = vector.load %arg6[%c0_12, %c0_13] : memref<32x32xbf16, #tpu.memory_space<vmem>>, vector<32x32xbf16>
    %cst_14 = arith.constant dense<0.000000e+00> : vector<12x32xf32>
    %22 = tpu.matmul %16, %21, %cst_14 {dimension_numbers = #tpu.dot_dimension_numbers<[1], [0], [0], [1], [0, 0, 1, 1], [], []>} : vector<12x32xbf16>, vector<32x32xbf16>, vector<12x32xf32> -> vector<12x32xf32>
    %c0_15 = arith.constant 0 : index
    %c0_16 = arith.constant 0 : index
    %23 = vector.load %arg7[%c0_15, %c0_16] : memref<12x96xf32, #tpu.memory_space<vmem>>, vector<12x96xf32>
    %24 = vector.extract_strided_slice %23 {offsets = [0, 0], sizes = [12, 32], strides = [1, 1]} : vector<12x96xf32> to vector<12x32xf32>
    %25 = vector.extract_strided_slice %23 {offsets = [0, 32], sizes = [12, 32], strides = [1, 1]} : vector<12x96xf32> to vector<12x32xf32>
    %26 = vector.extract_strided_slice %23 {offsets = [0, 64], sizes = [12, 32], strides = [1, 1]} : vector<12x96xf32> to vector<12x32xf32>
    %c31_i32 = arith.constant 31 : i32
    %27 = tpu.dynamic_rotate %18 by %c31_i32 dim 1 : vector<12x32xf32>, i32 -> vector<12x32xf32>
    %c1_i32 = arith.constant 1 : i32
    %28 = tpu.dynamic_rotate %18 by %c1_i32 dim 1 : vector<12x32xf32>, i32 -> vector<12x32xf32>
    %29 = arith.mulf %18, %24 : vector<12x32xf32>
    %30 = arith.mulf %27, %25 : vector<12x32xf32>
    %31 = arith.addf %29, %30 : vector<12x32xf32>
    %32 = arith.mulf %28, %26 : vector<12x32xf32>
    %33 = arith.addf %31, %32 : vector<12x32xf32>
    %34 = arith.truncf %33 : vector<12x32xf32> to vector<12x32xbf16>
    %c0_17 = arith.constant 0 : index
    %c0_18 = arith.constant 0 : index
    %c0_19 = arith.constant 0 : index
    %35 = vector.load %arg9[%c0_17, %c0_18, %c0_19] : memref<1x12x32xbf16, #tpu.memory_space<vmem>>, vector<1x12x32xbf16>
    %36 = vector.shape_cast %35 : vector<1x12x32xbf16> to vector<12x32xbf16>
    %37 = vector.shape_cast %34 : vector<12x32xbf16> to vector<1x12x32xbf16>
    tpu.vector_store %arg9[%c0_17, %c0_18, %c0_19], %37 {strides = array<i32>} : memref<1x12x32xbf16, #tpu.memory_space<vmem>>, vector<1x12x32xbf16>,
    %c0_20 = arith.constant 0 : index
    %c0_21 = arith.constant 0 : index
    %38 = vector.load %arg8[%c0_20, %c0_21] : memref<12x96xf32, #tpu.memory_space<vmem>>, vector<12x96xf32>
    %39 = vector.extract_strided_slice %38 {offsets = [0, 0], sizes = [12, 32], strides = [1, 1]} : vector<12x96xf32> to vector<12x32xf32>
    %40 = vector.extract_strided_slice %38 {offsets = [0, 32], sizes = [12, 32], strides = [1, 1]} : vector<12x96xf32> to vector<12x32xf32>
    %41 = vector.extract_strided_slice %38 {offsets = [0, 64], sizes = [12, 32], strides = [1, 1]} : vector<12x96xf32> to vector<12x32xf32>
    %c31_i32_22 = arith.constant 31 : i32
    %42 = tpu.dynamic_rotate %20 by %c31_i32_22 dim 1 : vector<12x32xf32>, i32 -> vector<12x32xf32>
    %c1_i32_23 = arith.constant 1 : i32
    %43 = tpu.dynamic_rotate %20 by %c1_i32_23 dim 1 : vector<12x32xf32>, i32 -> vector<12x32xf32>
    %44 = arith.mulf %20, %39 : vector<12x32xf32>
    %45 = arith.mulf %42, %40 : vector<12x32xf32>
    %46 = arith.addf %44, %45 : vector<12x32xf32>
    %47 = arith.mulf %43, %41 : vector<12x32xf32>
    %48 = arith.addf %46, %47 : vector<12x32xf32>
    %49 = arith.truncf %48 : vector<12x32xf32> to vector<12x32xbf16>
    %c0_24 = arith.constant 0 : index
    %c0_25 = arith.constant 0 : index
    %c0_26 = arith.constant 0 : index
    %50 = vector.load %arg10[%c0_24, %c0_25, %c0_26] : memref<1x12x32xbf16, #tpu.memory_space<vmem>>, vector<1x12x32xbf16>
    %51 = vector.shape_cast %50 : vector<1x12x32xbf16> to vector<12x32xbf16>
    %52 = vector.shape_cast %49 : vector<12x32xbf16> to vector<1x12x32xbf16>
    tpu.vector_store %arg10[%c0_24, %c0_25, %c0_26], %52 {strides = array<i32>} : memref<1x12x32xbf16, #tpu.memory_space<vmem>>, vector<1x12x32xbf16>,
    %53 = arith.truncf %22 : vector<12x32xf32> to vector<12x32xbf16>
    %c0_27 = arith.constant 0 : index
    %c0_28 = arith.constant 0 : index
    %c0_29 = arith.constant 0 : index
    %54 = vector.load %arg11[%c0_27, %c0_28, %c0_29] : memref<1x12x32xbf16, #tpu.memory_space<vmem>>, vector<1x12x32xbf16>
    %55 = vector.shape_cast %54 : vector<1x12x32xbf16> to vector<12x32xbf16>
    %56 = vector.shape_cast %53 : vector<12x32xbf16> to vector<1x12x32xbf16>
    tpu.vector_store %arg11[%c0_27, %c0_28, %c0_29], %56 {strides = array<i32>} : memref<1x12x32xbf16, #tpu.memory_space<vmem>>, vector<1x12x32xbf16>,
    return
  }
  func.func @transform_0(%arg0: i32, %arg1: i32) -> (i32, i32, i32) {
    %c0_i32 = arith.constant 0 : i32
    %c0_i32_0 = arith.constant 0 : i32
    return %arg0, %arg1, %c0_i32 : i32, i32, i32
  }
  func.func @transform_1(%arg0: i32, %arg1: i32) -> (i32, i32) {
    %c0_i32 = arith.constant 0 : i32
    %c0_i32_0 = arith.constant 0 : i32
    %c0_i32_1 = arith.constant 0 : i32
    return %c0_i32, %c0_i32_0 : i32, i32
  }
  func.func @transform_2(%arg0: i32, %arg1: i32) -> (i32, i32) {
    %c0_i32 = arith.constant 0 : i32
    %c0_i32_0 = arith.constant 0 : i32
    %c0_i32_1 = arith.constant 0 : i32
    return %c0_i32, %c0_i32_0 : i32, i32
  }
  func.func @transform_3(%arg0: i32, %arg1: i32) -> (i32, i32) {
    %c0_i32 = arith.constant 0 : i32
    %c0_i32_0 = arith.constant 0 : i32
    %c0_i32_1 = arith.constant 0 : i32
    return %c0_i32, %c0_i32_0 : i32, i32
  }
  func.func @transform_4(%arg0: i32, %arg1: i32) -> (i32, i32) {
    %c0_i32 = arith.constant 0 : i32
    %c0_i32_0 = arith.constant 0 : i32
    %c0_i32_1 = arith.constant 0 : i32
    return %c0_i32, %c0_i32_0 : i32, i32
  }
  func.func @transform_5(%arg0: i32, %arg1: i32) -> (i32, i32) {
    %c0_i32 = arith.constant 0 : i32
    %c0_i32_0 = arith.constant 0 : i32
    return %arg1, %c0_i32 : i32, i32
  }
  func.func @transform_6(%arg0: i32, %arg1: i32) -> (i32, i32) {
    %c0_i32 = arith.constant 0 : i32
    %c0_i32_0 = arith.constant 0 : i32
    return %arg1, %c0_i32 : i32, i32
  }
  func.func @transform_7(%arg0: i32, %arg1: i32) -> (i32, i32, i32) {
    %c0_i32 = arith.constant 0 : i32
    %c0_i32_0 = arith.constant 0 : i32
    return %arg0, %arg1, %c0_i32 : i32, i32, i32
  }
  func.func @transform_8(%arg0: i32, %arg1: i32) -> (i32, i32, i32) {
    %c0_i32 = arith.constant 0 : i32
    %c0_i32_0 = arith.constant 0 : i32
    return %arg0, %arg1, %c0_i32 : i32, i32, i32
  }
  func.func @transform_9(%arg0: i32, %arg1: i32) -> (i32, i32, i32) {
    %c0_i32 = arith.constant 0 : i32
    %c0_i32_0 = arith.constant 0 : i32
    return %arg0, %arg1, %c0_i32 : i32, i32, i32
  }
}

module attributes {stable_mosaic.version = 11 : i64} {
  func.func @_flash_attn_kernel(%arg0: i32, %arg1: i32, %arg2: i32, %arg3: memref<1x12x32xbf16, #tpu.memory_space<vmem>>, %arg4: memref<1x12x32xbf16, #tpu.memory_space<vmem>>, %arg5: memref<1x12x32xbf16, #tpu.memory_space<vmem>>, %arg6: memref<1x12x32xbf16, #tpu.memory_space<vmem>>, %arg7: memref<2x12x1xf32, #tpu.memory_space<vmem>>, %arg8: memref<12x32xf32, #tpu.memory_space<vmem>>, %arg9: memref<12x32xf32, #tpu.memory_space<vmem>>) attributes {dimension_semantics = [#tpu.dimension_semantics<parallel>, #tpu.dimension_semantics<parallel>, #tpu.dimension_semantics<arbitrary>], iteration_bounds = array<i64: 2, 1, 1>, scalar_prefetch = 0 : i64, scratch_operands = 3 : i64, tpu.core_type = #tpu.core_type<tc>, window_params = [{transform_indices = @transform_0, window_bounds = array<i64: 1, 12, 32>}, {transform_indices = @transform_1, window_bounds = array<i64: 1, 12, 32>}, {transform_indices = @transform_2, window_bounds = array<i64: 1, 12, 32>}, {transform_indices = @transform_3, window_bounds = array<i64: 1, 12, 32>}]} {
    %c0_i32 = arith.constant 0 : i32
    %0 = arith.cmpi eq, %arg2, %c0_i32 : i32
    %1 = arith.extui %0 : i1 to i32
    %c0_i32_0 = arith.constant 0 : i32
    %2 = arith.cmpi ne, %1, %c0_i32_0 : i32
    scf.if %2 {
      %cst = arith.constant -1.000000e+30 : f32
      %12 = vector.broadcast %cst : f32 to vector<2x12x1xf32>
      %c0 = arith.constant 0 : index
      %c0_5 = arith.constant 0 : index
      %c0_6 = arith.constant 0 : index
      %13 = vector.load %arg7[%c0, %c0_5, %c0_6] : memref<2x12x1xf32, #tpu.memory_space<vmem>>, vector<2x12x1xf32>
      tpu.vector_store %arg7[%c0, %c0_5, %c0_6], %12 {strides = array<i32>} : memref<2x12x1xf32, #tpu.memory_space<vmem>>, vector<2x12x1xf32>,
      %cst_7 = arith.constant 0.000000e+00 : f32
      %14 = vector.broadcast %cst_7 : f32 to vector<12x32xf32>
      %c0_8 = arith.constant 0 : index
      %c0_9 = arith.constant 0 : index
      %15 = vector.load %arg8[%c0_8, %c0_9] : memref<12x32xf32, #tpu.memory_space<vmem>>, vector<12x32xf32>
      tpu.vector_store %arg8[%c0_8, %c0_9], %14 {strides = array<i32>} : memref<12x32xf32, #tpu.memory_space<vmem>>, vector<12x32xf32>,
      %cst_10 = arith.constant 0.000000e+00 : f32
      %16 = vector.broadcast %cst_10 : f32 to vector<12x32xf32>
      %c0_11 = arith.constant 0 : index
      %c0_12 = arith.constant 0 : index
      %17 = vector.load %arg9[%c0_11, %c0_12] : memref<12x32xf32, #tpu.memory_space<vmem>>, vector<12x32xf32>
      tpu.vector_store %arg9[%c0_11, %c0_12], %16 {strides = array<i32>} : memref<12x32xf32, #tpu.memory_space<vmem>>, vector<12x32xf32>,
    } else {
    }
    %3 = arith.cmpi slt, %arg2, %arg1 : i32
    %4 = arith.extui %3 : i1 to i32
    %c0_i32_1 = arith.constant 0 : i32
    %5 = arith.cmpi ne, %4, %c0_i32_1 : i32
    scf.if %5 {
      %c0 = arith.constant 0 : index
      %c0_5 = arith.constant 0 : index
      %c0_6 = arith.constant 0 : index
      %12 = vector.load %arg3[%c0, %c0_5, %c0_6] : memref<1x12x32xbf16, #tpu.memory_space<vmem>>, vector<1x12x32xbf16>
      %13 = vector.shape_cast %12 : vector<1x12x32xbf16> to vector<12x32xbf16>
      %c0_7 = arith.constant 0 : index
      %c0_8 = arith.constant 0 : index
      %c0_9 = arith.constant 0 : index
      %14 = vector.load %arg4[%c0_7, %c0_8, %c0_9] : memref<1x12x32xbf16, #tpu.memory_space<vmem>>, vector<1x12x32xbf16>
      %15 = vector.shape_cast %14 : vector<1x12x32xbf16> to vector<12x32xbf16>
      %c0_10 = arith.constant 0 : index
      %c0_11 = arith.constant 0 : index
      %c0_12 = arith.constant 0 : index
      %16 = vector.load %arg5[%c0_10, %c0_11, %c0_12] : memref<1x12x32xbf16, #tpu.memory_space<vmem>>, vector<1x12x32xbf16>
      %17 = vector.shape_cast %16 : vector<1x12x32xbf16> to vector<12x32xbf16>
      %18 = vector.extract_strided_slice %13 {offsets = [0, 0], sizes = [12, 16], strides = [1, 1]} : vector<12x32xbf16> to vector<12x16xbf16>
      %19 = vector.extract_strided_slice %15 {offsets = [0, 0], sizes = [12, 16], strides = [1, 1]} : vector<12x32xbf16> to vector<12x16xbf16>
      %cst = arith.constant dense<0.000000e+00> : vector<12x12xf32>
      %20 = tpu.matmul %18, %19, %cst {dimension_numbers = #tpu.dot_dimension_numbers<[1], [1], [0], [0], [0, 0, 1, 0], [], []>} : vector<12x16xbf16>, vector<12x16xbf16>, vector<12x12xf32> -> vector<12x12xf32>
      %c0_13 = arith.constant 0 : index
      %c0_14 = arith.constant 0 : index
      %c0_15 = arith.constant 0 : index
      %21 = vector.load %arg7[%c0_13, %c0_14, %c0_15] : memref<2x12x1xf32, #tpu.memory_space<vmem>>, vector<1x12x1xf32>
      %22 = vector.shape_cast %21 : vector<1x12x1xf32> to vector<12x1xf32>
      %cst_16 = arith.constant dense<0xFF800000> : vector<12xf32>
      %23 = vector.multi_reduction <maximumf>, %20, %cst_16 [1] : vector<12x12xf32> to vector<12xf32>
      %24 = vector.shape_cast %23 : vector<12xf32> to vector<12x1xf32>
      %25 = arith.maximumf %22, %24 : vector<12x1xf32>
      %26 = arith.subf %22, %25 : vector<12x1xf32>
      %27 = math.exp %26 : vector<12x1xf32>
      %28 = vector.broadcast %25 : vector<12x1xf32> to vector<12x12xf32>
      %29 = arith.subf %20, %28 : vector<12x12xf32>
      %30 = math.exp %29 : vector<12x12xf32>
      %c0_17 = arith.constant 0 : index
      %c0_18 = arith.constant 0 : index
      %31 = vector.load %arg8[%c0_17, %c0_18] : memref<12x32xf32, #tpu.memory_space<vmem>>, vector<12x16xf32>
      %32 = vector.broadcast %27 : vector<12x1xf32> to vector<12x16xf32>
      %33 = arith.mulf %32, %31 : vector<12x16xf32>
      %cst_19 = arith.constant dense<0.000000e+00> : vector<12xf32>
      %34 = vector.multi_reduction <add>, %30, %cst_19 [1] : vector<12x12xf32> to vector<12xf32>
      %35 = vector.shape_cast %34 : vector<12xf32> to vector<12x1xf32>
      %36 = vector.broadcast %35 : vector<12x1xf32> to vector<12x16xf32>
      %37 = arith.addf %33, %36 : vector<12x16xf32>
      %c0_20 = arith.constant 0 : index
      %c0_21 = arith.constant 0 : index
      %38 = vector.load %arg8[%c0_20, %c0_21] : memref<12x32xf32, #tpu.memory_space<vmem>>, vector<12x16xf32>
      tpu.vector_store %arg8[%c0_20, %c0_21], %37 {strides = array<i32>} : memref<12x32xf32, #tpu.memory_space<vmem>>, vector<12x16xf32>,
      %c0_22 = arith.constant 0 : index
      %c0_23 = arith.constant 0 : index
      %39 = vector.load %arg9[%c0_22, %c0_23] : memref<12x32xf32, #tpu.memory_space<vmem>>, vector<12x16xf32>
      %40 = vector.broadcast %27 : vector<12x1xf32> to vector<12x16xf32>
      %41 = arith.mulf %40, %39 : vector<12x16xf32>
      %42 = arith.truncf %30 : vector<12x12xf32> to vector<12x12xbf16>
      %43 = vector.extract_strided_slice %17 {offsets = [0, 0], sizes = [12, 16], strides = [1, 1]} : vector<12x32xbf16> to vector<12x16xbf16>
      %cst_24 = arith.constant dense<0.000000e+00> : vector<12x16xf32>
      %44 = tpu.matmul %42, %43, %cst_24 {dimension_numbers = #tpu.dot_dimension_numbers<[1], [0], [0], [1], [0, 0, 1, 1], [], []>} : vector<12x12xbf16>, vector<12x16xbf16>, vector<12x16xf32> -> vector<12x16xf32>
      %45 = arith.addf %41, %44 : vector<12x16xf32>
      %c0_25 = arith.constant 0 : index
      %c0_26 = arith.constant 0 : index
      %46 = vector.load %arg9[%c0_25, %c0_26] : memref<12x32xf32, #tpu.memory_space<vmem>>, vector<12x16xf32>
      tpu.vector_store %arg9[%c0_25, %c0_26], %45 {strides = array<i32>} : memref<12x32xf32, #tpu.memory_space<vmem>>, vector<12x16xf32>,
      %c0_27 = arith.constant 0 : index
      %c0_28 = arith.constant 0 : index
      %c0_29 = arith.constant 0 : index
      %47 = vector.load %arg7[%c0_27, %c0_28, %c0_29] : memref<2x12x1xf32, #tpu.memory_space<vmem>>, vector<1x12x1xf32>
      %48 = vector.shape_cast %47 : vector<1x12x1xf32> to vector<12x1xf32>
      %49 = vector.shape_cast %25 : vector<12x1xf32> to vector<1x12x1xf32>
      tpu.vector_store %arg7[%c0_27, %c0_28, %c0_29], %49 {strides = array<i32>} : memref<2x12x1xf32, #tpu.memory_space<vmem>>, vector<1x12x1xf32>,
      %50 = vector.extract_strided_slice %13 {offsets = [0, 16], sizes = [12, 16], strides = [1, 1]} : vector<12x32xbf16> to vector<12x16xbf16>
      %51 = vector.extract_strided_slice %15 {offsets = [0, 16], sizes = [12, 16], strides = [1, 1]} : vector<12x32xbf16> to vector<12x16xbf16>
      %cst_30 = arith.constant dense<0.000000e+00> : vector<12x12xf32>
      %52 = tpu.matmul %50, %51, %cst_30 {dimension_numbers = #tpu.dot_dimension_numbers<[1], [1], [0], [0], [0, 0, 1, 0], [], []>} : vector<12x16xbf16>, vector<12x16xbf16>, vector<12x12xf32> -> vector<12x12xf32>
      %c1 = arith.constant 1 : index
      %c0_31 = arith.constant 0 : index
      %c0_32 = arith.constant 0 : index
      %53 = vector.load %arg7[%c1, %c0_31, %c0_32] : memref<2x12x1xf32, #tpu.memory_space<vmem>>, vector<1x12x1xf32>
      %54 = vector.shape_cast %53 : vector<1x12x1xf32> to vector<12x1xf32>
      %cst_33 = arith.constant dense<0xFF800000> : vector<12xf32>
      %55 = vector.multi_reduction <maximumf>, %52, %cst_33 [1] : vector<12x12xf32> to vector<12xf32>
      %56 = vector.shape_cast %55 : vector<12xf32> to vector<12x1xf32>
      %57 = arith.maximumf %54, %56 : vector<12x1xf32>
      %58 = arith.subf %54, %57 : vector<12x1xf32>
      %59 = math.exp %58 : vector<12x1xf32>
      %60 = vector.broadcast %57 : vector<12x1xf32> to vector<12x12xf32>
      %61 = arith.subf %52, %60 : vector<12x12xf32>
      %62 = math.exp %61 : vector<12x12xf32>
      %c0_34 = arith.constant 0 : index
      %c16 = arith.constant 16 : index
      %63 = vector.load %arg8[%c0_34, %c16] : memref<12x32xf32, #tpu.memory_space<vmem>>, vector<12x16xf32>
      %64 = vector.broadcast %59 : vector<12x1xf32> to vector<12x16xf32>
      %65 = arith.mulf %64, %63 : vector<12x16xf32>
      %cst_35 = arith.constant dense<0.000000e+00> : vector<12xf32>
      %66 = vector.multi_reduction <add>, %62, %cst_35 [1] : vector<12x12xf32> to vector<12xf32>
      %67 = vector.shape_cast %66 : vector<12xf32> to vector<12x1xf32>
      %68 = vector.broadcast %67 : vector<12x1xf32> to vector<12x16xf32>
      %69 = arith.addf %65, %68 : vector<12x16xf32>
      %c0_36 = arith.constant 0 : index
      %c16_37 = arith.constant 16 : index
      %70 = vector.load %arg8[%c0_36, %c16_37] : memref<12x32xf32, #tpu.memory_space<vmem>>, vector<12x16xf32>
      tpu.vector_store %arg8[%c0_36, %c16_37], %69 {strides = array<i32>} : memref<12x32xf32, #tpu.memory_space<vmem>>, vector<12x16xf32>,
      %c0_38 = arith.constant 0 : index
      %c16_39 = arith.constant 16 : index
      %71 = vector.load %arg9[%c0_38, %c16_39] : memref<12x32xf32, #tpu.memory_space<vmem>>, vector<12x16xf32>
      %72 = vector.broadcast %59 : vector<12x1xf32> to vector<12x16xf32>
      %73 = arith.mulf %72, %71 : vector<12x16xf32>
      %74 = arith.truncf %62 : vector<12x12xf32> to vector<12x12xbf16>
      %75 = vector.extract_strided_slice %17 {offsets = [0, 16], sizes = [12, 16], strides = [1, 1]} : vector<12x32xbf16> to vector<12x16xbf16>
      %cst_40 = arith.constant dense<0.000000e+00> : vector<12x16xf32>
      %76 = tpu.matmul %74, %75, %cst_40 {dimension_numbers = #tpu.dot_dimension_numbers<[1], [0], [0], [1], [0, 0, 1, 1], [], []>} : vector<12x12xbf16>, vector<12x16xbf16>, vector<12x16xf32> -> vector<12x16xf32>
      %77 = arith.addf %73, %76 : vector<12x16xf32>
      %c0_41 = arith.constant 0 : index
      %c16_42 = arith.constant 16 : index
      %78 = vector.load %arg9[%c0_41, %c16_42] : memref<12x32xf32, #tpu.memory_space<vmem>>, vector<12x16xf32>
      tpu.vector_store %arg9[%c0_41, %c16_42], %77 {strides = array<i32>} : memref<12x32xf32, #tpu.memory_space<vmem>>, vector<12x16xf32>,
      %c1_43 = arith.constant 1 : index
      %c0_44 = arith.constant 0 : index
      %c0_45 = arith.constant 0 : index
      %79 = vector.load %arg7[%c1_43, %c0_44, %c0_45] : memref<2x12x1xf32, #tpu.memory_space<vmem>>, vector<1x12x1xf32>
      %80 = vector.shape_cast %79 : vector<1x12x1xf32> to vector<12x1xf32>
      %81 = vector.shape_cast %57 : vector<12x1xf32> to vector<1x12x1xf32>
      tpu.vector_store %arg7[%c1_43, %c0_44, %c0_45], %81 {strides = array<i32>} : memref<2x12x1xf32, #tpu.memory_space<vmem>>, vector<1x12x1xf32>,
    } else {
    }
    %6 = arith.cmpi eq, %arg2, %arg1 : i32
    %7 = arith.extui %6 : i1 to i32
    %c0_i32_2 = arith.constant 0 : i32
    %8 = arith.cmpi ne, %7, %c0_i32_2 : i32
    scf.if %8 {
      %c0 = arith.constant 0 : index
      %c0_5 = arith.constant 0 : index
      %c0_6 = arith.constant 0 : index
      %12 = vector.load %arg3[%c0, %c0_5, %c0_6] : memref<1x12x32xbf16, #tpu.memory_space<vmem>>, vector<1x12x32xbf16>
      %13 = vector.shape_cast %12 : vector<1x12x32xbf16> to vector<12x32xbf16>
      %c0_7 = arith.constant 0 : index
      %c0_8 = arith.constant 0 : index
      %c0_9 = arith.constant 0 : index
      %14 = vector.load %arg4[%c0_7, %c0_8, %c0_9] : memref<1x12x32xbf16, #tpu.memory_space<vmem>>, vector<1x12x32xbf16>
      %15 = vector.shape_cast %14 : vector<1x12x32xbf16> to vector<12x32xbf16>
      %c0_10 = arith.constant 0 : index
      %c0_11 = arith.constant 0 : index
      %c0_12 = arith.constant 0 : index
      %16 = vector.load %arg5[%c0_10, %c0_11, %c0_12] : memref<1x12x32xbf16, #tpu.memory_space<vmem>>, vector<1x12x32xbf16>
      %17 = vector.shape_cast %16 : vector<1x12x32xbf16> to vector<12x32xbf16>
      %18 = tpu.iota {dimensions = array<i32: 1>} : vector<12x12xi32>
      %19 = tpu.iota {dimensions = array<i32: 0>} : vector<12x12xi32>
      %20 = arith.cmpi sle, %18, %19 : vector<12x12xi32>
      %21 = vector.extract_strided_slice %13 {offsets = [0, 0], sizes = [12, 16], strides = [1, 1]} : vector<12x32xbf16> to vector<12x16xbf16>
      %22 = vector.extract_strided_slice %15 {offsets = [0, 0], sizes = [12, 16], strides = [1, 1]} : vector<12x32xbf16> to vector<12x16xbf16>
      %cst = arith.constant dense<0.000000e+00> : vector<12x12xf32>
      %23 = tpu.matmul %21, %22, %cst {dimension_numbers = #tpu.dot_dimension_numbers<[1], [1], [0], [0], [0, 0, 1, 0], [], []>} : vector<12x16xbf16>, vector<12x16xbf16>, vector<12x12xf32> -> vector<12x12xf32>
      %cst_13 = arith.constant -1.000000e+30 : f32
      %24 = vector.broadcast %cst_13 : f32 to vector<12x12xf32>
      %25 = arith.select %20, %23, %24 : vector<12x12xi1>, vector<12x12xf32>
      %c0_14 = arith.constant 0 : index
      %c0_15 = arith.constant 0 : index
      %c0_16 = arith.constant 0 : index
      %26 = vector.load %arg7[%c0_14, %c0_15, %c0_16] : memref<2x12x1xf32, #tpu.memory_space<vmem>>, vector<1x12x1xf32>
      %27 = vector.shape_cast %26 : vector<1x12x1xf32> to vector<12x1xf32>
      %cst_17 = arith.constant dense<0xFF800000> : vector<12xf32>
      %28 = vector.multi_reduction <maximumf>, %25, %cst_17 [1] : vector<12x12xf32> to vector<12xf32>
      %29 = vector.shape_cast %28 : vector<12xf32> to vector<12x1xf32>
      %30 = arith.maximumf %27, %29 : vector<12x1xf32>
      %31 = arith.subf %27, %30 : vector<12x1xf32>
      %32 = math.exp %31 : vector<12x1xf32>
      %33 = vector.broadcast %30 : vector<12x1xf32> to vector<12x12xf32>
      %34 = arith.subf %25, %33 : vector<12x12xf32>
      %35 = math.exp %34 : vector<12x12xf32>
      %c0_18 = arith.constant 0 : index
      %c0_19 = arith.constant 0 : index
      %36 = vector.load %arg8[%c0_18, %c0_19] : memref<12x32xf32, #tpu.memory_space<vmem>>, vector<12x16xf32>
      %37 = vector.broadcast %32 : vector<12x1xf32> to vector<12x16xf32>
      %38 = arith.mulf %37, %36 : vector<12x16xf32>
      %cst_20 = arith.constant dense<0.000000e+00> : vector<12xf32>
      %39 = vector.multi_reduction <add>, %35, %cst_20 [1] : vector<12x12xf32> to vector<12xf32>
      %40 = vector.shape_cast %39 : vector<12xf32> to vector<12x1xf32>
      %41 = vector.broadcast %40 : vector<12x1xf32> to vector<12x16xf32>
      %42 = arith.addf %38, %41 : vector<12x16xf32>
      %c0_21 = arith.constant 0 : index
      %c0_22 = arith.constant 0 : index
      %43 = vector.load %arg8[%c0_21, %c0_22] : memref<12x32xf32, #tpu.memory_space<vmem>>, vector<12x16xf32>
      tpu.vector_store %arg8[%c0_21, %c0_22], %42 {strides = array<i32>} : memref<12x32xf32, #tpu.memory_space<vmem>>, vector<12x16xf32>,
      %c0_23 = arith.constant 0 : index
      %c0_24 = arith.constant 0 : index
      %44 = vector.load %arg9[%c0_23, %c0_24] : memref<12x32xf32, #tpu.memory_space<vmem>>, vector<12x16xf32>
      %45 = vector.broadcast %32 : vector<12x1xf32> to vector<12x16xf32>
      %46 = arith.mulf %45, %44 : vector<12x16xf32>
      %47 = arith.truncf %35 : vector<12x12xf32> to vector<12x12xbf16>
      %48 = vector.extract_strided_slice %17 {offsets = [0, 0], sizes = [12, 16], strides = [1, 1]} : vector<12x32xbf16> to vector<12x16xbf16>
      %cst_25 = arith.constant dense<0.000000e+00> : vector<12x16xf32>
      %49 = tpu.matmul %47, %48, %cst_25 {dimension_numbers = #tpu.dot_dimension_numbers<[1], [0], [0], [1], [0, 0, 1, 1], [], []>} : vector<12x12xbf16>, vector<12x16xbf16>, vector<12x16xf32> -> vector<12x16xf32>
      %50 = arith.addf %46, %49 : vector<12x16xf32>
      %c0_26 = arith.constant 0 : index
      %c0_27 = arith.constant 0 : index
      %51 = vector.load %arg9[%c0_26, %c0_27] : memref<12x32xf32, #tpu.memory_space<vmem>>, vector<12x16xf32>
      tpu.vector_store %arg9[%c0_26, %c0_27], %50 {strides = array<i32>} : memref<12x32xf32, #tpu.memory_space<vmem>>, vector<12x16xf32>,
      %c0_28 = arith.constant 0 : index
      %c0_29 = arith.constant 0 : index
      %c0_30 = arith.constant 0 : index
      %52 = vector.load %arg7[%c0_28, %c0_29, %c0_30] : memref<2x12x1xf32, #tpu.memory_space<vmem>>, vector<1x12x1xf32>
      %53 = vector.shape_cast %52 : vector<1x12x1xf32> to vector<12x1xf32>
      %54 = vector.shape_cast %30 : vector<12x1xf32> to vector<1x12x1xf32>
      tpu.vector_store %arg7[%c0_28, %c0_29, %c0_30], %54 {strides = array<i32>} : memref<2x12x1xf32, #tpu.memory_space<vmem>>, vector<1x12x1xf32>,
      %55 = vector.extract_strided_slice %13 {offsets = [0, 16], sizes = [12, 16], strides = [1, 1]} : vector<12x32xbf16> to vector<12x16xbf16>
      %56 = vector.extract_strided_slice %15 {offsets = [0, 16], sizes = [12, 16], strides = [1, 1]} : vector<12x32xbf16> to vector<12x16xbf16>
      %cst_31 = arith.constant dense<0.000000e+00> : vector<12x12xf32>
      %57 = tpu.matmul %55, %56, %cst_31 {dimension_numbers = #tpu.dot_dimension_numbers<[1], [1], [0], [0], [0, 0, 1, 0], [], []>} : vector<12x16xbf16>, vector<12x16xbf16>, vector<12x12xf32> -> vector<12x12xf32>
      %cst_32 = arith.constant -1.000000e+30 : f32
      %58 = vector.broadcast %cst_32 : f32 to vector<12x12xf32>
      %59 = arith.select %20, %57, %58 : vector<12x12xi1>, vector<12x12xf32>
      %c1 = arith.constant 1 : index
      %c0_33 = arith.constant 0 : index
      %c0_34 = arith.constant 0 : index
      %60 = vector.load %arg7[%c1, %c0_33, %c0_34] : memref<2x12x1xf32, #tpu.memory_space<vmem>>, vector<1x12x1xf32>
      %61 = vector.shape_cast %60 : vector<1x12x1xf32> to vector<12x1xf32>
      %cst_35 = arith.constant dense<0xFF800000> : vector<12xf32>
      %62 = vector.multi_reduction <maximumf>, %59, %cst_35 [1] : vector<12x12xf32> to vector<12xf32>
      %63 = vector.shape_cast %62 : vector<12xf32> to vector<12x1xf32>
      %64 = arith.maximumf %61, %63 : vector<12x1xf32>
      %65 = arith.subf %61, %64 : vector<12x1xf32>
      %66 = math.exp %65 : vector<12x1xf32>
      %67 = vector.broadcast %64 : vector<12x1xf32> to vector<12x12xf32>
      %68 = arith.subf %59, %67 : vector<12x12xf32>
      %69 = math.exp %68 : vector<12x12xf32>
      %c0_36 = arith.constant 0 : index
      %c16 = arith.constant 16 : index
      %70 = vector.load %arg8[%c0_36, %c16] : memref<12x32xf32, #tpu.memory_space<vmem>>, vector<12x16xf32>
      %71 = vector.broadcast %66 : vector<12x1xf32> to vector<12x16xf32>
      %72 = arith.mulf %71, %70 : vector<12x16xf32>
      %cst_37 = arith.constant dense<0.000000e+00> : vector<12xf32>
      %73 = vector.multi_reduction <add>, %69, %cst_37 [1] : vector<12x12xf32> to vector<12xf32>
      %74 = vector.shape_cast %73 : vector<12xf32> to vector<12x1xf32>
      %75 = vector.broadcast %74 : vector<12x1xf32> to vector<12x16xf32>
      %76 = arith.addf %72, %75 : vector<12x16xf32>
      %c0_38 = arith.constant 0 : index
      %c16_39 = arith.constant 16 : index
      %77 = vector.load %arg8[%c0_38, %c16_39] : memref<12x32xf32, #tpu.memory_space<vmem>>, vector<12x16xf32>
      tpu.vector_store %arg8[%c0_38, %c16_39], %76 {strides = array<i32>} : memref<12x32xf32, #tpu.memory_space<vmem>>, vector<12x16xf32>,
      %c0_40 = arith.constant 0 : index
      %c16_41 = arith.constant 16 : index
      %78 = vector.load %arg9[%c0_40, %c16_41] : memref<12x32xf32, #tpu.memory_space<vmem>>, vector<12x16xf32>
      %79 = vector.broadcast %66 : vector<12x1xf32> to vector<12x16xf32>
      %80 = arith.mulf %79, %78 : vector<12x16xf32>
      %81 = arith.truncf %69 : vector<12x12xf32> to vector<12x12xbf16>
      %82 = vector.extract_strided_slice %17 {offsets = [0, 16], sizes = [12, 16], strides = [1, 1]} : vector<12x32xbf16> to vector<12x16xbf16>
      %cst_42 = arith.constant dense<0.000000e+00> : vector<12x16xf32>
      %83 = tpu.matmul %81, %82, %cst_42 {dimension_numbers = #tpu.dot_dimension_numbers<[1], [0], [0], [1], [0, 0, 1, 1], [], []>} : vector<12x12xbf16>, vector<12x16xbf16>, vector<12x16xf32> -> vector<12x16xf32>
      %84 = arith.addf %80, %83 : vector<12x16xf32>
      %c0_43 = arith.constant 0 : index
      %c16_44 = arith.constant 16 : index
      %85 = vector.load %arg9[%c0_43, %c16_44] : memref<12x32xf32, #tpu.memory_space<vmem>>, vector<12x16xf32>
      tpu.vector_store %arg9[%c0_43, %c16_44], %84 {strides = array<i32>} : memref<12x32xf32, #tpu.memory_space<vmem>>, vector<12x16xf32>,
      %c1_45 = arith.constant 1 : index
      %c0_46 = arith.constant 0 : index
      %c0_47 = arith.constant 0 : index
      %86 = vector.load %arg7[%c1_45, %c0_46, %c0_47] : memref<2x12x1xf32, #tpu.memory_space<vmem>>, vector<1x12x1xf32>
      %87 = vector.shape_cast %86 : vector<1x12x1xf32> to vector<12x1xf32>
      %88 = vector.shape_cast %64 : vector<12x1xf32> to vector<1x12x1xf32>
      tpu.vector_store %arg7[%c1_45, %c0_46, %c0_47], %88 {strides = array<i32>} : memref<2x12x1xf32, #tpu.memory_space<vmem>>, vector<1x12x1xf32>,
    } else {
    }
    %c0_i32_3 = arith.constant 0 : i32
    %9 = arith.cmpi eq, %arg2, %c0_i32_3 : i32
    %10 = arith.extui %9 : i1 to i32
    %c0_i32_4 = arith.constant 0 : i32
    %11 = arith.cmpi ne, %10, %c0_i32_4 : i32
    scf.if %11 {
      %c0 = arith.constant 0 : index
      %c0_5 = arith.constant 0 : index
      %12 = vector.load %arg9[%c0, %c0_5] : memref<12x32xf32, #tpu.memory_space<vmem>>, vector<12x32xf32>
      %c0_6 = arith.constant 0 : index
      %c0_7 = arith.constant 0 : index
      %13 = vector.load %arg8[%c0_6, %c0_7] : memref<12x32xf32, #tpu.memory_space<vmem>>, vector<12x32xf32>
      %14 = tpu.reciprocal %13 {approx = true} : vector<12x32xf32> -> vector<12x32xf32>
      %15 = arith.mulf %12, %14 : vector<12x32xf32>
      %16 = arith.truncf %15 : vector<12x32xf32> to vector<12x32xbf16>
      %c0_8 = arith.constant 0 : index
      %c0_9 = arith.constant 0 : index
      %c0_10 = arith.constant 0 : index
      %17 = vector.load %arg6[%c0_8, %c0_9, %c0_10] : memref<1x12x32xbf16, #tpu.memory_space<vmem>>, vector<1x12x32xbf16>
      %18 = vector.shape_cast %17 : vector<1x12x32xbf16> to vector<12x32xbf16>
      %19 = vector.shape_cast %16 : vector<12x32xbf16> to vector<1x12x32xbf16>
      tpu.vector_store %arg6[%c0_8, %c0_9, %c0_10], %19 {strides = array<i32>} : memref<1x12x32xbf16, #tpu.memory_space<vmem>>, vector<1x12x32xbf16>,
    } else {
    }
    return
  }
  func.func @transform_0(%arg0: i32, %arg1: i32, %arg2: i32) -> (i32, i32, i32) {
    %c0_i32 = arith.constant 0 : i32
    %c0_i32_0 = arith.constant 0 : i32
    return %arg0, %arg1, %c0_i32 : i32, i32, i32
  }
  func.func @transform_1(%arg0: i32, %arg1: i32, %arg2: i32) -> (i32, i32, i32) {
    %0 = arith.minsi %arg2, %arg1 : i32
    %c0_i32 = arith.constant 0 : i32
    %c0_i32_0 = arith.constant 0 : i32
    return %arg0, %0, %c0_i32 : i32, i32, i32
  }
  func.func @transform_2(%arg0: i32, %arg1: i32, %arg2: i32) -> (i32, i32, i32) {
    %0 = arith.minsi %arg2, %arg1 : i32
    %c0_i32 = arith.constant 0 : i32
    %c0_i32_0 = arith.constant 0 : i32
    return %arg0, %0, %c0_i32 : i32, i32, i32
  }
  func.func @transform_3(%arg0: i32, %arg1: i32, %arg2: i32) -> (i32, i32, i32) {
    %c0_i32 = arith.constant 0 : i32
    %c0_i32_0 = arith.constant 0 : i32
    return %arg0, %arg1, %c0_i32 : i32, i32, i32
  }
}

module attributes {stable_mosaic.version = 11 : i64} {
  func.func @_linear_residual_kernel(%arg0: i32, %arg1: i32, %arg2: memref<24x32xbf16, #tpu.memory_space<vmem>>, %arg3: memref<32x32xbf16, #tpu.memory_space<vmem>>, %arg4: memref<24x32xf32, #tpu.memory_space<vmem>>, %arg5: memref<24x32xf32, #tpu.memory_space<vmem>>) attributes {dimension_semantics = [#tpu.dimension_semantics<parallel>, #tpu.dimension_semantics<parallel>], iteration_bounds = array<i64: 1, 1>, scalar_prefetch = 0 : i64, scratch_operands = 0 : i64, tpu.core_type = #tpu.core_type<tc>, window_params = [{transform_indices = @transform_0, window_bounds = array<i64: 24, 32>}, {transform_indices = @transform_1, window_bounds = array<i64: 32, 32>}, {transform_indices = @transform_2, window_bounds = array<i64: 24, 32>}, {transform_indices = @transform_3, window_bounds = array<i64: 24, 32>}]} {
    %c0 = arith.constant 0 : index
    %c0_0 = arith.constant 0 : index
    %0 = vector.load %arg4[%c0, %c0_0] : memref<24x32xf32, #tpu.memory_space<vmem>>, vector<24x32xf32>
    %c0_1 = arith.constant 0 : index
    %c0_2 = arith.constant 0 : index
    %1 = vector.load %arg2[%c0_1, %c0_2] : memref<24x32xbf16, #tpu.memory_space<vmem>>, vector<24x32xbf16>
    %c0_3 = arith.constant 0 : index
    %c0_4 = arith.constant 0 : index
    %2 = vector.load %arg3[%c0_3, %c0_4] : memref<32x32xbf16, #tpu.memory_space<vmem>>, vector<32x32xbf16>
    %cst = arith.constant dense<0.000000e+00> : vector<24x32xf32>
    %3 = tpu.matmul %1, %2, %cst {dimension_numbers = #tpu.dot_dimension_numbers<[1], [0], [0], [1], [0, 0, 1, 1], [], []>} : vector<24x32xbf16>, vector<32x32xbf16>, vector<24x32xf32> -> vector<24x32xf32>
    %4 = arith.addf %0, %3 : vector<24x32xf32>
    %c0_5 = arith.constant 0 : index
    %c0_6 = arith.constant 0 : index
    %5 = vector.load %arg5[%c0_5, %c0_6] : memref<24x32xf32, #tpu.memory_space<vmem>>, vector<24x32xf32>
    tpu.vector_store %arg5[%c0_5, %c0_6], %4 {strides = array<i32>} : memref<24x32xf32, #tpu.memory_space<vmem>>, vector<24x32xf32>,
    return
  }
  func.func @transform_0(%arg0: i32, %arg1: i32) -> (i32, i32) {
    %c0_i32 = arith.constant 0 : i32
    %c0_i32_0 = arith.constant 0 : i32
    return %arg0, %c0_i32 : i32, i32
  }
  func.func @transform_1(%arg0: i32, %arg1: i32) -> (i32, i32) {
    %c0_i32 = arith.constant 0 : i32
    %c0_i32_0 = arith.constant 0 : i32
    return %c0_i32, %arg1 : i32, i32
  }
  func.func @transform_2(%arg0: i32, %arg1: i32) -> (i32, i32) {
    %c0_i32 = arith.constant 0 : i32
    return %arg0, %arg1 : i32, i32
  }
  func.func @transform_3(%arg0: i32, %arg1: i32) -> (i32, i32) {
    %c0_i32 = arith.constant 0 : i32
    return %arg0, %arg1 : i32, i32
  }
}

module attributes {stable_mosaic.version = 11 : i64} {
  func.func @_ff_glu_kernel(%arg0: i32, %arg1: i32, %arg2: memref<24x32xf32, #tpu.memory_space<vmem>>, %arg3: memref<1x32xf32, #tpu.memory_space<vmem>>, %arg4: memref<32x128xbf16, #tpu.memory_space<vmem>>, %arg5: memref<32x128xbf16, #tpu.memory_space<vmem>>, %arg6: memref<128x32xbf16, #tpu.memory_space<vmem>>, %arg7: memref<24x32xf32, #tpu.memory_space<vmem>>, %arg8: memref<24x32xbf16, #tpu.memory_space<vmem>>, %arg9: memref<24x32xf32, #tpu.memory_space<vmem>>) attributes {dimension_semantics = [#tpu.dimension_semantics<parallel>, #tpu.dimension_semantics<arbitrary>], iteration_bounds = array<i64: 1, 1>, scalar_prefetch = 0 : i64, scratch_operands = 2 : i64, tpu.core_type = #tpu.core_type<tc>, window_params = [{transform_indices = @transform_0, window_bounds = array<i64: 24, 32>}, {pipeline_mode = #tpu.pipeline_mode<synchronous>, transform_indices = @transform_1, window_bounds = array<i64: 1, 32>}, {transform_indices = @transform_2, window_bounds = array<i64: 32, 128>}, {transform_indices = @transform_3, window_bounds = array<i64: 32, 128>}, {transform_indices = @transform_4, window_bounds = array<i64: 128, 32>}, {transform_indices = @transform_5, window_bounds = array<i64: 24, 32>}]} {
    %c0_i32 = arith.constant 0 : i32
    %0 = arith.cmpi eq, %arg1, %c0_i32 : i32
    %1 = arith.extui %0 : i1 to i32
    %c0_i32_0 = arith.constant 0 : i32
    %2 = arith.cmpi ne, %1, %c0_i32_0 : i32
    scf.if %2 {
      %c0_20 = arith.constant 0 : index
      %c0_21 = arith.constant 0 : index
      %31 = vector.load %arg2[%c0_20, %c0_21] : memref<24x32xf32, #tpu.memory_space<vmem>>, vector<24x32xf32>
      %c0_22 = arith.constant 0 : index
      %c0_23 = arith.constant 0 : index
      %32 = vector.load %arg3[%c0_22, %c0_23] : memref<1x32xf32, #tpu.memory_space<vmem>>, vector<1x32xf32>
      %33 = arith.mulf %31, %31 : vector<24x32xf32>
      %cst_24 = arith.constant dense<0.000000e+00> : vector<24xf32>
      %34 = vector.multi_reduction <add>, %33, %cst_24 [1] : vector<24x32xf32> to vector<24xf32>
      %35 = vector.shape_cast %34 : vector<24xf32> to vector<24x1xf32>
      %cst_25 = arith.constant 1.000000e-24 : f32
      %36 = vector.broadcast %cst_25 : f32 to vector<24x1xf32>
      %37 = arith.maximumf %35, %36 : vector<24x1xf32>
      %38 = math.rsqrt %37 : vector<24x1xf32>
      %cst_26 = arith.constant 3.200000e+01 : f32
      %39 = math.sqrt %cst_26 : f32
      %40 = vector.broadcast %39 : f32 to vector<24x1xf32>
      %41 = arith.mulf %38, %40 : vector<24x1xf32>
      %42 = vector.broadcast %41 : vector<24x1xf32> to vector<24x32xf32>
      %43 = arith.mulf %31, %42 : vector<24x32xf32>
      %44 = vector.broadcast %32 : vector<1x32xf32> to vector<24x32xf32>
      %45 = arith.mulf %43, %44 : vector<24x32xf32>
      %46 = arith.truncf %45 : vector<24x32xf32> to vector<24x32xbf16>
      %c0_27 = arith.constant 0 : index
      %c0_28 = arith.constant 0 : index
      %47 = vector.load %arg8[%c0_27, %c0_28] : memref<24x32xbf16, #tpu.memory_space<vmem>>, vector<24x32xbf16>
      tpu.vector_store %arg8[%c0_27, %c0_28], %46 {strides = array<i32>} : memref<24x32xbf16, #tpu.memory_space<vmem>>, vector<24x32xbf16>,
      %cst_29 = arith.constant 0.000000e+00 : f32
      %48 = vector.broadcast %cst_29 : f32 to vector<24x32xf32>
      %c0_30 = arith.constant 0 : index
      %c0_31 = arith.constant 0 : index
      %49 = vector.load %arg9[%c0_30, %c0_31] : memref<24x32xf32, #tpu.memory_space<vmem>>, vector<24x32xf32>
      tpu.vector_store %arg9[%c0_30, %c0_31], %48 {strides = array<i32>} : memref<24x32xf32, #tpu.memory_space<vmem>>, vector<24x32xf32>,
    } else {
    }
    %c0 = arith.constant 0 : index
    %c0_1 = arith.constant 0 : index
    %3 = vector.load %arg8[%c0, %c0_1] : memref<24x32xbf16, #tpu.memory_space<vmem>>, vector<24x32xbf16>
    %c0_2 = arith.constant 0 : index
    %c0_3 = arith.constant 0 : index
    %4 = vector.load %arg4[%c0_2, %c0_3] : memref<32x128xbf16, #tpu.memory_space<vmem>>, vector<32x128xbf16>
    %cst = arith.constant dense<0.000000e+00> : vector<24x128xf32>
    %5 = tpu.matmul %3, %4, %cst {dimension_numbers = #tpu.dot_dimension_numbers<[1], [0], [0], [1], [0, 0, 1, 1], [], []>} : vector<24x32xbf16>, vector<32x128xbf16>, vector<24x128xf32> -> vector<24x128xf32>
    %c0_4 = arith.constant 0 : index
    %c0_5 = arith.constant 0 : index
    %6 = vector.load %arg5[%c0_4, %c0_5] : memref<32x128xbf16, #tpu.memory_space<vmem>>, vector<32x128xbf16>
    %cst_6 = arith.constant dense<0.000000e+00> : vector<24x128xf32>
    %7 = tpu.matmul %3, %6, %cst_6 {dimension_numbers = #tpu.dot_dimension_numbers<[1], [0], [0], [1], [0, 0, 1, 1], [], []>} : vector<24x32xbf16>, vector<32x128xbf16>, vector<24x128xf32> -> vector<24x128xf32>
    %8 = arith.mulf %7, %7 : vector<24x128xf32>
    %9 = arith.mulf %7, %8 : vector<24x128xf32>
    %cst_7 = arith.constant 4.471500e-02 : f32
    %10 = vector.broadcast %cst_7 : f32 to vector<24x128xf32>
    %11 = arith.mulf %10, %9 : vector<24x128xf32>
    %12 = arith.addf %7, %11 : vector<24x128xf32>
    %cst_8 = arith.constant 0.797884583 : f32
    %13 = vector.broadcast %cst_8 : f32 to vector<24x128xf32>
    %14 = arith.mulf %13, %12 : vector<24x128xf32>
    %15 = math.tanh %14 : vector<24x128xf32>
    %cst_9 = arith.constant 1.000000e+00 : f32
    %16 = vector.broadcast %cst_9 : f32 to vector<24x128xf32>
    %17 = arith.addf %16, %15 : vector<24x128xf32>
    %cst_10 = arith.constant 5.000000e-01 : f32
    %18 = vector.broadcast %cst_10 : f32 to vector<24x128xf32>
    %19 = arith.mulf %18, %17 : vector<24x128xf32>
    %20 = arith.mulf %7, %19 : vector<24x128xf32>
    %21 = arith.mulf %5, %20 : vector<24x128xf32>
    %22 = arith.truncf %21 : vector<24x128xf32> to vector<24x128xbf16>
    %c0_11 = arith.constant 0 : index
    %c0_12 = arith.constant 0 : index
    %23 = vector.load %arg9[%c0_11, %c0_12] : memref<24x32xf32, #tpu.memory_space<vmem>>, vector<24x32xf32>
    %c0_13 = arith.constant 0 : index
    %c0_14 = arith.constant 0 : index
    %24 = vector.load %arg6[%c0_13, %c0_14] : memref<128x32xbf16, #tpu.memory_space<vmem>>, vector<128x32xbf16>
    %cst_15 = arith.constant dense<0.000000e+00> : vector<24x32xf32>
    %25 = tpu.matmul %22, %24, %cst_15 {dimension_numbers = #tpu.dot_dimension_numbers<[1], [0], [0], [1], [0, 0, 1, 1], [], []>} : vector<24x128xbf16>, vector<128x32xbf16>, vector<24x32xf32> -> vector<24x32xf32>
    %26 = arith.addf %23, %25 : vector<24x32xf32>
    %c0_16 = arith.constant 0 : index
    %c0_17 = arith.constant 0 : index
    %27 = vector.load %arg9[%c0_16, %c0_17] : memref<24x32xf32, #tpu.memory_space<vmem>>, vector<24x32xf32>
    tpu.vector_store %arg9[%c0_16, %c0_17], %26 {strides = array<i32>} : memref<24x32xf32, #tpu.memory_space<vmem>>, vector<24x32xf32>,
    %c0_i32_18 = arith.constant 0 : i32
    %28 = arith.cmpi eq, %arg1, %c0_i32_18 : i32
    %29 = arith.extui %28 : i1 to i32
    %c0_i32_19 = arith.constant 0 : i32
    %30 = arith.cmpi ne, %29, %c0_i32_19 : i32
    scf.if %30 {
      %c0_20 = arith.constant 0 : index
      %c0_21 = arith.constant 0 : index
      %31 = vector.load %arg9[%c0_20, %c0_21] : memref<24x32xf32, #tpu.memory_space<vmem>>, vector<24x32xf32>
      %c0_22 = arith.constant 0 : index
      %c0_23 = arith.constant 0 : index
      %32 = vector.load %arg2[%c0_22, %c0_23] : memref<24x32xf32, #tpu.memory_space<vmem>>, vector<24x32xf32>
      %33 = arith.addf %31, %32 : vector<24x32xf32>
      %c0_24 = arith.constant 0 : index
      %c0_25 = arith.constant 0 : index
      %34 = vector.load %arg7[%c0_24, %c0_25] : memref<24x32xf32, #tpu.memory_space<vmem>>, vector<24x32xf32>
      tpu.vector_store %arg7[%c0_24, %c0_25], %33 {strides = array<i32>} : memref<24x32xf32, #tpu.memory_space<vmem>>, vector<24x32xf32>,
    } else {
    }
    return
  }
  func.func @transform_0(%arg0: i32, %arg1: i32) -> (i32, i32) {
    %c0_i32 = arith.constant 0 : i32
    %c0_i32_0 = arith.constant 0 : i32
    return %arg0, %c0_i32 : i32, i32
  }
  func.func @transform_1(%arg0: i32, %arg1: i32) -> (i32, i32) {
    %c0_i32 = arith.constant 0 : i32
    %c0_i32_0 = arith.constant 0 : i32
    %c0_i32_1 = arith.constant 0 : i32
    return %c0_i32, %c0_i32_0 : i32, i32
  }
  func.func @transform_2(%arg0: i32, %arg1: i32) -> (i32, i32) {
    %c0_i32 = arith.constant 0 : i32
    %c0_i32_0 = arith.constant 0 : i32
    return %c0_i32, %arg1 : i32, i32
  }
  func.func @transform_3(%arg0: i32, %arg1: i32) -> (i32, i32) {
    %c0_i32 = arith.constant 0 : i32
    %c0_i32_0 = arith.constant 0 : i32
    return %c0_i32, %arg1 : i32, i32
  }
  func.func @transform_4(%arg0: i32, %arg1: i32) -> (i32, i32) {
    %c0_i32 = arith.constant 0 : i32
    %c0_i32_0 = arith.constant 0 : i32
    return %arg1, %c0_i32 : i32, i32
  }
  func.func @transform_5(%arg0: i32, %arg1: i32) -> (i32, i32) {
    %c0_i32 = arith.constant 0 : i32
    %c0_i32_0 = arith.constant 0 : i32
    return %arg0, %c0_i32 : i32, i32
  }
}

module attributes {stable_mosaic.version = 11 : i64} {
  func.func @_norm_latent_cdist_kernel(%arg0: i32, %arg1: i32, %arg2: memref<16x32xf32, #tpu.memory_space<vmem>>, %arg3: memref<1x32xf32, #tpu.memory_space<vmem>>, %arg4: memref<32x16xbf16, #tpu.memory_space<vmem>>, %arg5: memref<1x16xf32, #tpu.memory_space<vmem>>, %arg6: memref<16x128xbf16, #tpu.memory_space<vmem>>, %arg7: memref<1x128xf32, #tpu.memory_space<vmem>>, %arg8: memref<16x128xf32, #tpu.memory_space<vmem>>, %arg9: memref<16x16xbf16, #tpu.memory_space<vmem>>, %arg10: memref<16x1xf32, #tpu.memory_space<vmem>>) attributes {dimension_semantics = [#tpu.dimension_semantics<parallel>, #tpu.dimension_semantics<arbitrary>], iteration_bounds = array<i64: 1, 1>, scalar_prefetch = 0 : i64, scratch_operands = 2 : i64, tpu.core_type = #tpu.core_type<tc>, window_params = [{transform_indices = @transform_0, window_bounds = array<i64: 16, 32>}, {pipeline_mode = #tpu.pipeline_mode<synchronous>, transform_indices = @transform_1, window_bounds = array<i64: 1, 32>}, {pipeline_mode = #tpu.pipeline_mode<synchronous>, transform_indices = @transform_2, window_bounds = array<i64: 32, 16>}, {pipeline_mode = #tpu.pipeline_mode<synchronous>, transform_indices = @transform_3, window_bounds = array<i64: 1, 16>}, {transform_indices = @transform_4, window_bounds = array<i64: 16, 128>}, {transform_indices = @transform_5, window_bounds = array<i64: 1, 128>}, {transform_indices = @transform_6, window_bounds = array<i64: 16, 128>}]} {
    %c0_i32 = arith.constant 0 : i32
    %0 = arith.cmpi eq, %arg1, %c0_i32 : i32
    %1 = arith.extui %0 : i1 to i32
    %c0_i32_0 = arith.constant 0 : i32
    %2 = arith.cmpi ne, %1, %c0_i32_0 : i32
    scf.if %2 {
      %c0_13 = arith.constant 0 : index
      %c0_14 = arith.constant 0 : index
      %20 = vector.load %arg2[%c0_13, %c0_14] : memref<16x32xf32, #tpu.memory_space<vmem>>, vector<16x32xf32>
      %c0_15 = arith.constant 0 : index
      %c0_16 = arith.constant 0 : index
      %21 = vector.load %arg3[%c0_15, %c0_16] : memref<1x32xf32, #tpu.memory_space<vmem>>, vector<1x32xf32>
      %22 = arith.mulf %20, %20 : vector<16x32xf32>
      %cst_17 = arith.constant dense<0.000000e+00> : vector<16xf32>
      %23 = vector.multi_reduction <add>, %22, %cst_17 [1] : vector<16x32xf32> to vector<16xf32>
      %24 = vector.shape_cast %23 : vector<16xf32> to vector<16x1xf32>
      %cst_18 = arith.constant 1.000000e-24 : f32
      %25 = vector.broadcast %cst_18 : f32 to vector<16x1xf32>
      %26 = arith.maximumf %24, %25 : vector<16x1xf32>
      %27 = math.rsqrt %26 : vector<16x1xf32>
      %cst_19 = arith.constant 3.200000e+01 : f32
      %28 = math.sqrt %cst_19 : f32
      %29 = vector.broadcast %28 : f32 to vector<16x1xf32>
      %30 = arith.mulf %27, %29 : vector<16x1xf32>
      %31 = vector.broadcast %30 : vector<16x1xf32> to vector<16x32xf32>
      %32 = arith.mulf %20, %31 : vector<16x32xf32>
      %33 = vector.broadcast %21 : vector<1x32xf32> to vector<16x32xf32>
      %34 = arith.mulf %32, %33 : vector<16x32xf32>
      %35 = arith.truncf %34 : vector<16x32xf32> to vector<16x32xbf16>
      %c0_20 = arith.constant 0 : index
      %c0_21 = arith.constant 0 : index
      %36 = vector.load %arg4[%c0_20, %c0_21] : memref<32x16xbf16, #tpu.memory_space<vmem>>, vector<32x16xbf16>
      %cst_22 = arith.constant dense<0.000000e+00> : vector<16x16xf32>
      %37 = tpu.matmul %35, %36, %cst_22 {dimension_numbers = #tpu.dot_dimension_numbers<[1], [0], [0], [1], [0, 0, 1, 1], [], []>} : vector<16x32xbf16>, vector<32x16xbf16>, vector<16x16xf32> -> vector<16x16xf32>
      %c0_23 = arith.constant 0 : index
      %c0_24 = arith.constant 0 : index
      %38 = vector.load %arg5[%c0_23, %c0_24] : memref<1x16xf32, #tpu.memory_space<vmem>>, vector<1x16xf32>
      %39 = vector.broadcast %38 : vector<1x16xf32> to vector<16x16xf32>
      %40 = arith.addf %37, %39 : vector<16x16xf32>
      %41 = arith.truncf %40 : vector<16x16xf32> to vector<16x16xbf16>
      %c0_25 = arith.constant 0 : index
      %c0_26 = arith.constant 0 : index
      %42 = vector.load %arg9[%c0_25, %c0_26] : memref<16x16xbf16, #tpu.memory_space<vmem>>, vector<16x16xbf16>
      tpu.vector_store %arg9[%c0_25, %c0_26], %41 {strides = array<i32>} : memref<16x16xbf16, #tpu.memory_space<vmem>>, vector<16x16xbf16>,
      %43 = arith.mulf %40, %40 : vector<16x16xf32>
      %cst_27 = arith.constant dense<0.000000e+00> : vector<16xf32>
      %44 = vector.multi_reduction <add>, %43, %cst_27 [1] : vector<16x16xf32> to vector<16xf32>
      %45 = vector.shape_cast %44 : vector<16xf32> to vector<16x1xf32>
      %c0_28 = arith.constant 0 : index
      %c0_29 = arith.constant 0 : index
      %46 = vector.load %arg10[%c0_28, %c0_29] : memref<16x1xf32, #tpu.memory_space<vmem>>, vector<16x1xf32>
      tpu.vector_store %arg10[%c0_28, %c0_29], %45 {strides = array<i32>} : memref<16x1xf32, #tpu.memory_space<vmem>>, vector<16x1xf32>,
    } else {
    }
    %c0 = arith.constant 0 : index
    %c0_1 = arith.constant 0 : index
    %3 = vector.load %arg9[%c0, %c0_1] : memref<16x16xbf16, #tpu.memory_space<vmem>>, vector<16x16xbf16>
    %c0_2 = arith.constant 0 : index
    %c0_3 = arith.constant 0 : index
    %4 = vector.load %arg6[%c0_2, %c0_3] : memref<16x128xbf16, #tpu.memory_space<vmem>>, vector<16x128xbf16>
    %cst = arith.constant dense<0.000000e+00> : vector<16x128xf32>
    %5 = tpu.matmul %3, %4, %cst {dimension_numbers = #tpu.dot_dimension_numbers<[1], [0], [0], [1], [0, 0, 1, 1], [], []>} : vector<16x16xbf16>, vector<16x128xbf16>, vector<16x128xf32> -> vector<16x128xf32>
    %c0_4 = arith.constant 0 : index
    %c0_5 = arith.constant 0 : index
    %6 = vector.load %arg10[%c0_4, %c0_5] : memref<16x1xf32, #tpu.memory_space<vmem>>, vector<16x1xf32>
    %cst_6 = arith.constant 2.000000e+00 : f32
    %7 = vector.broadcast %cst_6 : f32 to vector<16x128xf32>
    %8 = arith.mulf %7, %5 : vector<16x128xf32>
    %9 = vector.broadcast %6 : vector<16x1xf32> to vector<16x128xf32>
    %10 = arith.subf %9, %8 : vector<16x128xf32>
    %c0_7 = arith.constant 0 : index
    %c0_8 = arith.constant 0 : index
    %11 = vector.load %arg7[%c0_7, %c0_8] : memref<1x128xf32, #tpu.memory_space<vmem>>, vector<1x128xf32>
    %12 = vector.broadcast %11 : vector<1x128xf32> to vector<16x128xf32>
    %13 = arith.addf %10, %12 : vector<16x128xf32>
    %cst_9 = arith.constant 0.000000e+00 : f32
    %14 = vector.broadcast %cst_9 : f32 to vector<16x128xf32>
    %15 = arith.maximumf %13, %14 : vector<16x128xf32>
    %16 = math.sqrt %15 : vector<16x128xf32>
    %cst_10 = arith.constant 0.000000e+00 : f32
    %17 = vector.broadcast %cst_10 : f32 to vector<16x128xf32>
    %18 = arith.subf %17, %16 : vector<16x128xf32>
    %c0_11 = arith.constant 0 : index
    %c0_12 = arith.constant 0 : index
    %19 = vector.load %arg8[%c0_11, %c0_12] : memref<16x128xf32, #tpu.memory_space<vmem>>, vector<16x128xf32>
    tpu.vector_store %arg8[%c0_11, %c0_12], %18 {strides = array<i32>} : memref<16x128xf32, #tpu.memory_space<vmem>>, vector<16x128xf32>,
    return
  }
  func.func @transform_0(%arg0: i32, %arg1: i32) -> (i32, i32) {
    %c0_i32 = arith.constant 0 : i32
    %c0_i32_0 = arith.constant 0 : i32
    return %arg0, %c0_i32 : i32, i32
  }
  func.func @transform_1(%arg0: i32, %arg1: i32) -> (i32, i32) {
    %c0_i32 = arith.constant 0 : i32
    %c0_i32_0 = arith.constant 0 : i32
    %c0_i32_1 = arith.constant 0 : i32
    return %c0_i32, %c0_i32_0 : i32, i32
  }
  func.func @transform_2(%arg0: i32, %arg1: i32) -> (i32, i32) {
    %c0_i32 = arith.constant 0 : i32
    %c0_i32_0 = arith.constant 0 : i32
    %c0_i32_1 = arith.constant 0 : i32
    return %c0_i32, %c0_i32_0 : i32, i32
  }
  func.func @transform_3(%arg0: i32, %arg1: i32) -> (i32, i32) {
    %c0_i32 = arith.constant 0 : i32
    %c0_i32_0 = arith.constant 0 : i32
    %c0_i32_1 = arith.constant 0 : i32
    return %c0_i32, %c0_i32_0 : i32, i32
  }
  func.func @transform_4(%arg0: i32, %arg1: i32) -> (i32, i32) {
    %c0_i32 = arith.constant 0 : i32
    %c0_i32_0 = arith.constant 0 : i32
    return %c0_i32, %arg1 : i32, i32
  }
  func.func @transform_5(%arg0: i32, %arg1: i32) -> (i32, i32) {
    %c0_i32 = arith.constant 0 : i32
    %c0_i32_0 = arith.constant 0 : i32
    return %c0_i32, %arg1 : i32, i32
  }
  func.func @transform_6(%arg0: i32, %arg1: i32) -> (i32, i32) {
    %c0_i32 = arith.constant 0 : i32
    return %arg0, %arg1 : i32, i32
  }
}

</mosaic_0001>

<bundles_post_ra>
// kernel: tile.29
= control target key start
LH: loop header
LB: loop body
LE: loop exit
PB: predicated region body
PF: predicated region fallthrough
CT: control target
= control target key end

     0   :  { %vm62_vm0 = vcmask 1047556   ;;  %vm64_vm1 = vcmask 130048   ;;  %vm79_vm2 = vcmask 261248   ;;  %s171_s0 = inlined_call_operand.vmem [shape: f32[12,2,16], index: 0, kind: input, shape index: {}]   ;;  %s172_s1 = inlined_call_operand.vmem [shape: f32[12,32], index: 1, kind: output, shape index: {}]  }
   0x1   :  { %v102_v0 = vld [vmem:[%s171_s0 + $0xe] sm:$0x3]  ;;  %v103_v1 = vld [vmem:[%s171_s0 + $0xc] sm:$0x3]  ;;  %v104_v2 = vld [vmem:[%s171_s0 + $0xa] sm:$0x3] }
   0x2   :  { %28 = vst [vmem:[#allocation0 + $0x38] sm:$0x3] %v102_v0  ;;  %33 = vst [vmem:[#allocation0 + $0x30] sm:$0x3] %v103_v1  ;;  %v105_v3 = vld [vmem:[%s171_s0 + $0x8] sm:$0x3] }
   0x3   :  { %38 = vst [vmem:[#allocation0 + $0x28] sm:$0x3] %v104_v2  ;;  %v106_v4 = vld [vmem:[%s171_s0 + $0x6] sm:$0x3]  ;;  %v107_v5 = vld [vmem:[%s171_s0 + $0x4] sm:$0x3] }
   0x4   :  { %43 = vst [vmem:[#allocation0 + $0x20] sm:$0x3] %v105_v3  ;;  %48 = vst [vmem:[#allocation0 + $0x18] sm:$0x3] %v106_v4  ;;  %v108_v6 = vld [vmem:[%s171_s0 + $0x2] sm:$0x3] }
   0x5   :  { %53 = vst [vmem:[#allocation0 + $0x10] sm:$0x3] %v107_v5  ;;  %v58_v7 = vld [vmem:[%s171_s0] sm:$0x3]  ;;  %57 = vst [vmem:[#allocation0 + $0x8] sm:$0x3] %v108_v6 }
   0x6   :  { %59 = vst [vmem:[#allocation0] sm:$0x3] %v58_v7  ;;  %v98_v8 = vld [vmem:[%s171_s0 + $0x16] sm:$0x3]  ;;  %v99_v9 = vld [vmem:[%s171_s0 + $0x14] sm:$0x3] }
   0x7   :  { %v100_v10 = vld [vmem:[%s171_s0 + $0x12] sm:$0x3]  ;;  %8 = vst [vmem:[#allocation0 + $0x58] sm:$0x3] %v98_v8  ;;  %13 = vst [vmem:[#allocation0 + $0x50] sm:$0x3] %v99_v9 }
   0x8   :  { %18 = vst [vmem:[#allocation0 + $0x48] sm:$0x3] %v100_v10  ;;  %v101_v11 = vld [vmem:[%s171_s0 + $0x10] sm:$0x3]  ;;  %s112_s0 = smov 16  }
   0x9   :  { %23 = vst [vmem:[#allocation0 + $0x40] sm:$0x3] %v101_v11 }
   0xb   :  { %v74_v12 = vld [vmem:[#allocation0 + $0x1] ss:$8 sm:$0xf0]   ;;  %v61_v13 = vld [vmem:[#allocation0] ss:$8 sm:$0xf0]  }
   0xd   :  { %v60_v14 = vld [vmem:[#allocation0] ss:$8 sm:$0xf]   ;;  %v72_v15 = vld [vmem:[#allocation0 + $0x1] ss:$8 sm:$0xf]  }
   0xe   :  { %v76_v16 = vsel %vm62_vm0, %v74_v12, %v72_v15  ;;  %v63_v17 = vsel %vm62_vm0, %v61_v13, %v60_v14 }
   0xf   :  { %77 = vrot.lane.b32.xlu0 %v76_v16, %s112_s0  ;;  %65 = vst.msk [vmem:[%s172_s1] sm:$0xff] %vm64_vm1, %v63_v17  }
  0x10   :  { %v67_v18 = vld [vmem:[#allocation0 + $0x40] ss:$8 sm:$0xf]   ;;  %v82_v19 = vld [vmem:[#allocation0 + $0x41] ss:$8 sm:$0xf]  }
  0x11   :  { %109 = vst.msk [vmem:[%s172_s1 + $0x8] sm:$0xf] %vm64_vm1, %v67_v18  }
  0x13   :  { %83 = vrot.lane.b32.xlu0 %v82_v19, %s112_s0 }
  0x81   :  { %v78_v20 = vpop.permute.xlu0 %77  }
  0x82   :  { %80 = vst.msk [vmem:[%s172_s1] sm:$0xff] %vm79_vm2, %v78_v20  }
  0x85   :  { %v84_v21 = vpop.permute.xlu0 %83  }
  0x86   :  { %110 = vst.msk [vmem:[%s172_s1 + $0x8] sm:$0xf] %vm79_vm2, %v84_v21  }

// kernel: _lambda_.10
= control target key start
LH: loop header
LB: loop body
LE: loop exit
PB: predicated region body
PF: predicated region fallthrough
CT: control target
= control target key end

     0   :  { %vm86_vm0 = vcmask 130048   ;;  %vm208_vm1 = vcmask 261120   ;;  %s407_s1 = inlined_call_operand.vmem [shape: bf16[16,32], index: 1, kind: input, shape index: {}]   ;;  %s408_s0 = inlined_call_operand.vmem [shape: bf16[128,16], index: 0, kind: input, shape index: {}]   ;;  %s409_s2 = inlined_call_operand.vmem [shape: f32[1,32], index: 2, kind: input, shape index: {}]   ;;  %s410_s3 = inlined_call_operand.vmem [shape: f32[128,32], index: 3, kind: output, shape index: {}]  }
   0x1   :  { %v276_v0 = vld [vmem:[%s407_s1] sm:$0xff]   ;;  %v279_v3 = vld [vmem:[%s408_s0 + $0x8] sm:$0xff]   ;;  %v281_v5 = vld [vmem:[%s408_s0 + $0x10] sm:$0xff]  }
   0x2   :  { %v277_v1 = vld [vmem:[%s408_s0] sm:$0xff]   ;;  %256 = vmatprep.subr.bf16.mxu0 %v276_v0  ;;  %274 = vmatprep.subr.bf16.mxu1 %v276_v0  ;;  %v280_v4 = vld [vmem:[%s408_s0 + $0x28] sm:$0xff]   ;;  %v282_v6 = vld [vmem:[%s408_s0 + $0x30] sm:$0xff]  }
   0x3   :  { %v278_v2 = vld [vmem:[%s408_s0 + $0x20] sm:$0xff]   ;;  %257 = vmatpush3.bf16.msra.mxu0 %v276_v0  ;;  %275 = vmatpush3.bf16.msra.mxu1 %v276_v0  ;;  %v283_v7 = vld [vmem:[%s408_s0 + $0x18] sm:$0xff]  }
   0x4   :  { %258 = vmatprep.mubr.msk.bf16.mxu0 %vm86_vm0, %v277_v1  ;;  %266 = vmatprep.mubr.msk.bf16.mxu1 %vm86_vm0, %v278_v2  ;;  %v284_v8 = vld [vmem:[%s408_s0 + $0x38] sm:$0xff]   ;;  %v229_v9 = vld [vmem:[%s409_s2] ss:$0 sm:$0xff] }
   0x6   :  { %259 = vmatmul.mubr.msk.bf16.vlgmr.msra.gmra.mrb[0].mxu0 %vm86_vm0, %v279_v3  ;;  %267 = vmatmul.mubr.msk.bf16.vlgmr.msra.gmra.mrb[0].mxu1 %vm86_vm0, %v280_v4 }
   0x7   :  { %262 = vmatprep.mubr.msk.bf16.mxu0 %vm86_vm0, %v281_v5  ;;  %270 = vmatprep.mubr.msk.bf16.mxu1 %vm86_vm0, %v282_v6 }
   0xe   :  { %263 = vmatmul.mubr.msk.bf16.gmra.mrb[4].mxu0 %vm86_vm0, %v283_v7  ;;  %271 = vmatmul.mubr.msk.bf16.gmra.mrb[4].mxu1 %vm86_vm0, %v284_v8 }
  0xd9   :  { %v260_v10 = vpop.f32.mrb[0].mxu0  ;;  %v268_v11 = vpop.f32.mrb[0].mxu1 }
  0xda   :  { %v154_v12 = vadd.f32 %v260_v10, %v229_v9  ;;  %v186_v13 = vadd.f32 %v268_v11, %v229_v9  ;;  %v145_v14 = vpop.f32.mrb[1].mxu0  ;;  %v177_v15 = vpop.f32.mrb[1].mxu1 }
  0xdb   :  { %v146_v16 = vadd.f32 %v229_v9, %v145_v14  ;;  %v178_v17 = vadd.f32 %v229_v9, %v177_v15  ;;  %v261_v18 = vpop.f32.mrb[2].mxu0  ;;  %v269_v19 = vpop.f32.mrb[2].mxu1 }
  0xdc   :  { %211 = vst.msk [vmem:[%s410_s3 + $0x10] sm:$0xff] %vm208_vm1, %v154_v12  ;;  %219 = vst.msk [vmem:[%s410_s3 + $0x50] sm:$0xff] %vm208_vm1, %v186_v13  ;;  %v157_v20 = vadd.f32 %v261_v18, %v229_v9  ;;  %v189_v21 = vadd.f32 %v269_v19, %v229_v9  ;;  %v148_v22 = vpop.f32.mrb[3].mxu0  ;;  %v180_v23 = vpop.f32.mrb[3].mxu1 }
  0xdd   :  { %209 = vst.msk [vmem:[%s410_s3] sm:$0xff] %vm208_vm1, %v146_v16  ;;  %217 = vst.msk [vmem:[%s410_s3 + $0x40] sm:$0xff] %vm208_vm1, %v178_v17  ;;  %v149_v24 = vadd.f32 %v229_v9, %v148_v22  ;;  %v181_v25 = vadd.f32 %v229_v9, %v180_v23 }
  0xde   :  { %212 = vst.msk [vmem:[%s410_s3 + $0x18] sm:$0xff] %vm208_vm1, %v157_v20  ;;  %220 = vst.msk [vmem:[%s410_s3 + $0x58] sm:$0xff] %vm208_vm1, %v189_v21 }
  0xdf   :  { %210 = vst.msk [vmem:[%s410_s3 + $0x8] sm:$0xff] %vm208_vm1, %v149_v24  ;;  %218 = vst.msk [vmem:[%s410_s3 + $0x48] sm:$0xff] %vm208_vm1, %v181_v25 }
  0xe1   :  { %v264_v26 = vpop.f32.mrb[4].mxu0  ;;  %v272_v27 = vpop.f32.mrb[4].mxu1 }
  0xe2   :  { %v170_v28 = vadd.f32 %v264_v26, %v229_v9  ;;  %v202_v29 = vadd.f32 %v272_v27, %v229_v9  ;;  %v161_v30 = vpop.f32.mrb[5].mxu0  ;;  %v193_v31 = vpop.f32.mrb[5].mxu1 }
  0xe3   :  { %v162_v32 = vadd.f32 %v229_v9, %v161_v30  ;;  %v194_v33 = vadd.f32 %v229_v9, %v193_v31  ;;  %v265_v34 = vpop.f32.mrb[6].mxu0  ;;  %v273_v35 = vpop.f32.mrb[6].mxu1 }
  0xe4   :  { %215 = vst.msk [vmem:[%s410_s3 + $0x30] sm:$0xff] %vm208_vm1, %v170_v28  ;;  %223 = vst.msk [vmem:[%s410_s3 + $0x70] sm:$0xff] %vm208_vm1, %v202_v29  ;;  %v173_v36 = vadd.f32 %v265_v34, %v229_v9  ;;  %v205_v37 = vadd.f32 %v273_v35, %v229_v9  ;;  %v164_v38 = vpop.f32.mrb[7].mxu0  ;;  %v196_v39 = vpop.f32.mrb[7].mxu1 }
  0xe5   :  { %213 = vst.msk [vmem:[%s410_s3 + $0x20] sm:$0xff] %vm208_vm1, %v162_v32  ;;  %221 = vst.msk [vmem:[%s410_s3 + $0x60] sm:$0xff] %vm208_vm1, %v194_v33  ;;  %v165_v40 = vadd.f32 %v229_v9, %v164_v38  ;;  %v197_v41 = vadd.f32 %v229_v9, %v196_v39 }
  0xe6   :  { %216 = vst.msk [vmem:[%s410_s3 + $0x38] sm:$0xff] %vm208_vm1, %v173_v36  ;;  %224 = vst.msk [vmem:[%s410_s3 + $0x78] sm:$0xff] %vm208_vm1, %v205_v37 }
  0xe7   :  { %214 = vst.msk [vmem:[%s410_s3 + $0x28] sm:$0xff] %vm208_vm1, %v165_v40  ;;  %222 = vst.msk [vmem:[%s410_s3 + $0x68] sm:$0xff] %vm208_vm1, %v197_v41 }

// kernel: _lambda_.13
= control target key start
LH: loop header
LB: loop body
LE: loop exit
PB: predicated region body
PF: predicated region fallthrough
CT: control target
= control target key end

     0   :  { %vm45_vm0 = vcmask 261120   ;;  %s187_s1 = inlined_call_operand.vmem [shape: bf16[32,32], index: 1, kind: input, shape index: {}]   ;;  %s188_s0 = inlined_call_operand.vmem [shape: bf16[24,32], index: 0, kind: input, shape index: {}]   ;;  %s189_s2 = inlined_call_operand.vmem [shape: f32[24,32], index: 2, kind: input, shape index: {}]   ;;  %s190_s3 = inlined_call_operand.vmem [shape: f32[24,32], index: 3, kind: output, shape index: {}]  }
   0x1   :  { %v128_v0 = vld [vmem:[%s187_s1] sm:$0xff]   ;;  %v129_v1 = vld [vmem:[%s187_s1 + $0x8] sm:$0xff]   ;;  %v17_v4 = vld [vmem:[%s189_s2 + $0x10] sm:$0xff] }
   0x2   :  { %120 = vmatprep.subr.bf16.mxu0 %v128_v0  ;;  %v130_v2 = vld [vmem:[%s188_s0] sm:$0xff]   ;;  %v131_v3 = vld [vmem:[%s188_s0 + $0x8] ss:$0 sps:$4 sm:$0xff]  }
   0x3   :  { %121 = vmatpush3.bf16.msra.mxu0 %v128_v0  ;;  %124 = vmatprep.mubr.msk.bf16.mxu0 %vm45_vm0, %v130_v2  ;;  %v15_v5 = vld [vmem:[%s189_s2] sm:$0xff]  ;;  %v16_v9 = vld [vmem:[%s189_s2 + $0x8] sm:$0xff] }
   0x4   :  { %122 = vmatprep.subr.bf16.mxu0 %v129_v1 }
   0x7   :  { %123 = vmatpush3.bf16.msra.mxu0 %v129_v1 }
   0xa   :  { %125 = vmatmul.mubr.msk.bf16.vlgmr.msra.gmra.mrb[0].mxu0 %vm45_vm0, %v131_v3 }
  0xdd   :  { %v126_v6 = vpop.f32.mrb[0].mxu0 }
  0xde   :  { %v102_v7 = vadd.f32 %v126_v6, %v17_v4  ;;  %v86_v8 = vpop.f32.mrb[1].mxu0 }
  0xdf   :  { %v100_v10 = vadd.f32 %v86_v8, %v15_v5  ;;  %v127_v11 = vpop.f32.mrb[2].mxu0 }
  0xe0   :  { %105 = vst.msk [vmem:[%s190_s3 + $0x10] sm:$0xff] %vm45_vm0, %v102_v7  ;;  %v89_v12 = vpop.f32.mrb[3].mxu0 }
  0xe1   :  { %103 = vst.msk [vmem:[%s190_s3] sm:$0xff] %vm45_vm0, %v100_v10  ;;  %v101_v13 = vadd.f32 %v89_v12, %v16_v9 }
  0xe3   :  { %104 = vst.msk [vmem:[%s190_s3 + $0x8] sm:$0xff] %vm45_vm0, %v101_v13 }

// kernel: _lambda_.11
= control target key start
LH: loop header
LB: loop body
LE: loop exit
PB: predicated region body
PF: predicated region fallthrough
CT: control target
= control target key end

     0   :  { %s1221_s30 = smov 0   ;;  %s1223_s10 = smov 0   ;;  %s1361_s0 = inlined_call_operand.vmem [shape: f32[2,12,32], index: 0, kind: input, shape index: {}]   ;;  %s1362_s1 = inlined_call_operand.vmem [shape: f32[1,32], index: 1, kind: input, shape index: {}]   ;;  %s1363_s2 = inlined_call_operand.vmem [shape: bf16[32,32], index: 2, kind: input, shape index: {}]   ;;  %s1364_s3 = inlined_call_operand.vmem [shape: bf16[32,32], index: 3, kind: input, shape index: {}]   ;;  %s1365_s4 = inlined_call_operand.vmem [shape: bf16[32,32], index: 4, kind: input, shape index: {}]   ;;  %s1366_s5 = inlined_call_operand.vmem [shape: f32[12,96], index: 5, kind: input, shape index: {}]   ;;  %s1367_s6 = inlined_call_operand.vmem [shape: f32[12,96], index: 6, kind: input, shape index: {}]   ;;  %s1368_s7 = inlined_call_operand.vmem [shape: bf16[2,12,32], index: 7, kind: output, shape index: {0}]   ;;  %s1369_s8 = inlined_call_operand.vmem [shape: bf16[2,12,32], index: 8, kind: output, shape index: {1}]   ;;  %s1370_s9 = inlined_call_operand.vmem [shape: bf16[2,12,32], index: 9, kind: output, shape index: {2}]  }
   0x1   :  { %s1225_s11 = smov 0  }
   0x2 LB: > { %s32_s12 = sadd.s32 1, %s1159_s10  ;;  %p1031_p0 = scmp.ge.s32.totalorder %s1163_s11, 1  ;;  %s1163_s11 = sphi %s1225_s11, %s20_s11   ;;  %s1159_s10 = sphi %s1223_s10, %s1372_s10   ;;  %s1155_s30 = sphi %s1221_s30, %s1371_s30  }
   0x3   : > { %p34_p1 = scmp.ge.s32.totalorder %s32_s12, 2  ;;  %p339_p2 = scmp.lt.s32.totalorder %s1163_s11, 3 }
   0x5   : > { %s1374_s12 = smov (%p34_p1, %s32_s12), 0  ;;  %p340_p3 = pnand %p1031_p0, %p339_p2 }
   0x6   : > { %p412_p4 = scmp.lt.s32.totalorder (!%p340_p3), %s1155_s30, 1  ;;  %vm469_vm0 = vcmask (!%p340_p3), 261120   ;;  %vm473_vm1 = vcmask (!%p340_p3), 257024   ;;  %v1131_v6 = vld [vmem:[%s1363_s2] sm:$0xff] (!%p340_p3)   ;;  %v1165_v8 = vmov (!%p340_p3), 0.0   ;;  %v1133_v9 = vld [vmem:[%s1363_s2 + $0x8] sm:$0xff] (!%p340_p3)  }
   0x7   : > { %343 = sbr.rel (%p340_p3) target bundleno = 774 (0x306), region = 48  ;;  %v1132_v7 = vld [vmem:[%s1364_s3] sm:$0xff] (!%p340_p3)   ;;  %1077 = vmatprep.subr.bf16.mxu0 (!%p340_p3), %v1165_v8  ;;  %1085 = vmatprep.subr.bf16.mxu1 (!%p340_p3), %v1165_v8  ;;  %v1134_v10 = vld [vmem:[%s1364_s3 + $0x8] sm:$0xff] (!%p340_p3)   ;;  %vm1166_vm2 = vmmov (!%p340_p3), 0   ;;  %s1167_s20 = smov (!%p340_p3), 32   ;;  %vm732_vm3 = vcmask (!%p340_p3), 254976  }
   0x8   : > { %1078 = vmatpush3.bf16.msra.mxu0 (!%p340_p3), %v1131_v6  ;;  %1086 = vmatpush3.bf16.msra.mxu1 (!%p340_p3), %v1132_v7  ;;  %v1040_v20 = vld [vmem:[%s1362_s1] ss:$0 sm:$0xff] (!%p340_p3)  ;;  %v1136_v26 = vld [vmem:[%s1365_s4 + $0x8] sm:$0xff] (!%p340_p3)   ;;  %s1168_s22 = smov (!%p340_p3), 97   ;;  %vm670_vm4 = vcmask (!%p340_p3), 1047808   ;;  %s1170_s28 = smov (!%p340_p3), 127  }
   0x9   : > { %1079 = vmatprep.subr.bf16.mxu0 (!%p340_p3), %v1165_v8  ;;  %1087 = vmatprep.subr.bf16.mxu1 (!%p340_p3), %v1165_v8  ;;  %v1135_v24 = vld [vmem:[%s1365_s4] sm:$0xff] (!%p340_p3)   ;;  %v669_v30 = vld [vmem:[%s1366_s5 + $0x8] sm:$0xf] (!%p340_p3) }
   0xa   : > { %1081 = vmatprep.mubr.msk.bf16.mxu0 (!%p340_p3), %vm1166_vm2, %v1165_v8  ;;  %1089 = vmatprep.mubr.msk.bf16.mxu1 (!%p340_p3), %vm1166_vm2, %v1165_v8  ;;  %v668_v27 = vld [vmem:[%s1366_s5] sm:$0xff] (!%p340_p3)  ;;  %v735_v31 = vld [vmem:[%s1367_s6 + $0x8] sm:$0xf] (!%p340_p3) }
   0xb   : > { %v734_v47 = vld [vmem:[%s1367_s6] sm:$0xff] (!%p340_p3) }
   0xc   : > { %1080 = vmatpush3.bf16.msra.mxu0 (!%p340_p3), %v1133_v9  ;;  %1088 = vmatpush3.bf16.msra.mxu1 (!%p340_p3), %v1134_v10 }
   0xd   : > { %1093 = vmatprep.subr.bf16.mxu0 (!%p340_p3), %v1165_v8 }
   0xe   : > { %s1376_s30 = smov (!%p412_p4, %s1155_s30), 1 }
   0xf   : > { %s1058_s13 = sshll.u32 %s1376_s30, 4  ;;  %s1298_s21 = sshll.u32 %s1376_s30, 3 }
  0x10   : > { %s419_s16 = scalar_lea.vmem %s1361_s0, %s1058_s13  ;;  %s461_s25 = scalar_lea.vmem %s1370_s9, %s1298_s21 }
  0x11   : > { %v464_v0 = vld [vmem:[%s419_s16] sm:$0xff]  ;;  %v465_v1 = vld [vmem:[%s419_s16 + $0x8] sm:$0xf]  ;;  %s1169_s30 = smov 95   ;;  %s441_s14 = scalar_lea.vmem %s1368_s7, %s1298_s21 }
  0x12   : > { %v467_v2 = vmul.f32 %v464_v0, %v464_v0  ;;  %v468_v3 = vmul.f32 %v465_v1, %v465_v1  ;;  %s451_s17 = scalar_lea.vmem %s1369_s8, %s1298_s21 }
  0x14   : > { %v470_v4 = vsel %vm469_vm0, %v467_v2, 0.0  ;;  %v474_v5 = vsel %vm473_vm1, %v468_v3, 0.0 }
  0x15   : > { %471 = vadd.xlane.f32.xlu0 %v470_v4 }
  0x19   : > { %475 = vadd.xlane.f32.xlu0 %v474_v5 }
  0xa2   : > { %v472_v11 = vpop.xlane.xlu0 %471 }
  0xa3   : > { %v477_v12 = vmax.f32 %v472_v11, 1e-24 }
  0xa5   : > { %1137 = vrsqrt.f32 %v477_v12 }
  0xa6   : > { %v476_v13 = vpop.xlane.xlu0 %475 }
  0xa7   : > { %v478_v14 = vmax.f32 %v476_v13, 1e-24 }
  0xa9   : > { %1139 = vrsqrt.f32 %v478_v14 }
  0xaf   : > { %v1138_v15 = vpop.eup %1137 }
  0xb0   : > { %v481_v16 = vmul.f32 5.656854, %v1138_v15 }
  0xb2   : > { %v483_v18 = vmul.f32 %v481_v16, %v464_v0 }
  0xb3   : > { %v1140_v17 = vpop.eup %1139 }
  0xb4   : > { %v482_v19 = vmul.f32 5.656854, %v1140_v17  ;;  %v491_v22 = vmul.f32 %v1040_v20, %v483_v18 }
  0xb6   : > { %v484_v21 = vmul.f32 %v482_v19, %v465_v1 }
  0xb8   : > { %v492_v23 = vmul.f32 %v1040_v20, %v484_v21 }
  0xba   : > { %v493_v25 = vpack.c.bf16 %v492_v23, %v491_v22 }
  0xbc   : > { %1082 = vmatmul.mubr.msk.bf16.vlgmr.msra.gmra.mrb[0].mxu0 %vm469_vm0, %v493_v25  ;;  %1090 = vmatmul.mubr.msk.bf16.vlgmr.msra.gmra.mrb[0].mxu1 %vm469_vm0, %v493_v25 }
  0xbd   : > { %1094 = vmatpush3.bf16.msra.mxu0 %v1135_v24  ;;  %1097 = vmatprep.mubr.msk.bf16.mxu0 %vm1166_vm2, %v1165_v8 }
  0xbe   : > { %1095 = vmatprep.subr.bf16.mxu0 %v1165_v8 }
  0xc1   : > { %1096 = vmatpush3.bf16.msra.mxu0 %v1136_v26 }
  0xc4   : > { %1098 = vmatmul.mubr.msk.bf16.vlgmr.msra.gmra.mrb[4].mxu0 %vm469_vm0, %v493_v25 }
 0x18f   : > { %v547_v28 = vpop.f32.mrb[0].mxu0  ;;  %v1277_v29 = vpop.f32.mrb[0].mxu1 }
 0x190   : > { %736 = vrot.lane.b32.xlu0 %v1277_v29, %s1167_s20  ;;  %v1091_v32 = vpop.f32.mrb[1].mxu1  ;;  %671 = vrot.lane.b32.xlu1 %v547_v28, %s1167_s20  ;;  %v1083_v33 = vpop.f32.mrb[1].mxu0  ;;  %v1288_v34 = vmul.f32 %v668_v27, %v547_v28  ;;  %v748_v23 = vmul.f32 %v734_v47, %v1277_v29 }
 0x191   : > { %v550_v35 = vpop.f32.mrb[2].mxu0  ;;  %v1290_v36 = vpop.f32.mrb[2].mxu1 }
 0x192   : > { %v1084_v37 = vpop.f32.mrb[3].mxu0  ;;  %v1092_v38 = vpop.f32.mrb[3].mxu1  ;;  %v1292_v39 = vmul.f32 %v669_v30, %v550_v35  ;;  %v1295_v40 = vmul.f32 %v735_v31, %v1290_v36 }
 0x194   : > { %674 = vrot.lane.b32.xlu1 %v550_v35, %s1167_s20  ;;  %689 = vrot.lane.b32.xlu0 %v669_v30, %s1168_s22 }
 0x197   : > { %v661_v41 = vpop.f32.mrb[4].mxu0 }
 0x198   : > { %v1066_v42 = vpack.c.bf16 %v661_v41, %v661_v41  ;;  %739 = vrot.lane.b32.xlu1 %v1290_v36, %s1167_s20  ;;  %v1099_v43 = vpop.f32.mrb[5].mxu0  ;;  %754 = vrot.lane.b32.xlu0 %v735_v31, %s1168_s22 }
 0x199   : > { %v664_v44 = vpop.f32.mrb[6].mxu0 }
 0x19a   : > { %806 = vst.msk [vmem:[%s461_s25] sm:$0xf] %vm473_vm1, %v1066_v42  ;;  %v1067_v45 = vpack.c.bf16 %v664_v44, %v664_v44  ;;  %v1100_v46 = vpop.f32.mrb[7].mxu0 }
 0x19c   : > { %807 = vst.msk [vmem:[%s461_s25 + $0x4] sm:$0x3] %vm732_vm3, %v1067_v45  ;;  %687 = vrot.lane.b32.xlu1 %v668_v27, %s1168_s22  ;;  %707 = vrot.lane.b32.xlu0 %v669_v30, %s1169_s30 }
 0x1a0   : > { %752 = vrot.lane.b32.xlu1 %v734_v47, %s1168_s22  ;;  %772 = vrot.lane.b32.xlu0 %v735_v31, %s1169_s30 }
 0x1a4   : > { %705 = vrot.lane.b32.xlu1 %v668_v27, %s1169_s30 }
 0x202   : > { %v672_v48 = vpop.permute.xlu1 %671  ;;  %v737_v50 = vpop.permute.xlu0 %736 }
 0x203   : > { %v673_v49 = vsel %vm670_vm4, %v672_v48, %v547_v28  ;;  %v738_v52 = vsel %vm670_vm4, %v737_v50, %v1277_v29 }
 0x204   : > { %677 = vrot.lane.b32.xlu1 %v673_v49, %s1167_s20 }
 0x206   : > { %v675_v51 = vpop.permute.xlu1 %674  ;;  %v690_v61 = vpop.permute.xlu0 %689 }
 0x207   : > { %v676_v53 = vsel %vm670_vm4, %v675_v51, %v550_v35 }
 0x208   : > { %742 = vrot.lane.b32.xlu1 %v738_v52, %s1167_s20 }
 0x20a   : > { %v740_v54 = vpop.permute.xlu1 %739  ;;  %v755_v2 = vpop.permute.xlu0 %754 }
 0x20b   : > { %v741_v55 = vsel %vm670_vm4, %v740_v54, %v1290_v36 }
 0x20c   : > { %679 = vrot.lane.b32.xlu1 %v676_v53, %s1167_s20 }
 0x20e   : > { %v688_v56 = vpop.permute.xlu1 %687  ;;  %v708_v8 = vpop.permute.xlu0 %707 }
 0x210   : > { %744 = vrot.lane.b32.xlu1 %v741_v55, %s1167_s20 }
 0x212   : > { %v753_v57 = vpop.permute.xlu1 %752  ;;  %v773_v14 = vpop.permute.xlu0 %772 }
 0x214   : > { %770 = vrot.lane.b32.xlu1 %v734_v47, %s1169_s30 }
 0x216   : > { %v706_v58 = vpop.permute.xlu1 %705 }
 0x276   : > { %v678_v59 = vpop.permute.xlu1 %677 }
 0x277   : > { %v681_v60 = vsel %vm670_vm4, %v678_v59, %v547_v28 }
 0x278   : > { %v693_v62 = vmul.f32 %v688_v56, %v681_v60  ;;  %v711_v5 = vmul.f32 %v706_v58, %v681_v60 }
 0x27a   : > { %697 = vrot.lane.b32.xlu1 %v693_v62, %s1170_s28  ;;  %v743_v63 = vpop.permute.xlu1 %742 }
 0x27b   : > { %v746_v0 = vsel %vm670_vm4, %v743_v63, %v1277_v29 }
 0x27c   : > { %v758_v1 = vmul.f32 %v753_v57, %v746_v0 }
 0x27e   : > { %762 = vrot.lane.b32.xlu1 %v758_v1, %s1170_s28  ;;  %v680_v3 = vpop.permute.xlu1 %679 }
 0x27f   : > { %v682_v4 = vsel %vm670_vm4, %v680_v3, %v550_v35 }
 0x280   : > { %v694_v6 = vmul.f32 %v690_v61, %v682_v4  ;;  %v712_v13 = vmul.f32 %v708_v8, %v682_v4 }
 0x282   : > { %715 = vrot.lane.b32.xlu1 %v711_v5, %s1168_s22  ;;  %699 = vrot.lane.b32.xlu0 %v694_v6, %s1170_s28  ;;  %v745_v7 = vpop.permute.xlu1 %744 }
 0x283   : > { %v747_v9 = vsel %vm670_vm4, %v745_v7, %v1290_v36 }
 0x284   : > { %v759_v10 = vmul.f32 %v755_v2, %v747_v9  ;;  %v777_v15 = vmul.f32 %v773_v14, %v747_v9 }
 0x286   : > { %764 = vrot.lane.b32.xlu0 %v759_v10, %s1170_s28  ;;  %v771_v11 = vpop.permute.xlu1 %770 }
 0x287   : > { %v776_v12 = vmul.f32 %v771_v11, %v746_v0 }
 0x289   : > { %780 = vrot.lane.b32.xlu1 %v776_v12, %s1168_s22 }
 0x28a   : > { %717 = vrot.lane.b32.xlu0 %v712_v13, %s1168_s22 }
 0x28e   : > { %782 = vrot.lane.b32.xlu0 %v777_v15, %s1168_s22 }
 0x2ec   : > { %v698_v16 = vpop.permute.xlu1 %697 }
 0x2ed   : > { %v703_v18 = vadd.f32 %v698_v16, %v1288_v34 }
 0x2f0   : > { %v763_v17 = vpop.permute.xlu1 %762 }
 0x2f1   : > { %v768_v25 = vadd.f32 %v763_v17, %v748_v23 }
 0x2f4   : > { %v700_v19 = vpop.permute.xlu0 %699  ;;  %v716_v20 = vpop.permute.xlu1 %715 }
 0x2f5   : > { %v721_v21 = vadd.f32 %v716_v20, %v703_v18  ;;  %v704_v26 = vadd.f32 %v700_v19, %v1292_v39 }
 0x2f7   : > { %v1062_v22 = vpack.c.bf16 %v721_v21, %v721_v21 }
 0x2f8   : > { %v765_v24 = vpop.permute.xlu0 %764 }
 0x2f9   : > { %731 = vst.msk [vmem:[%s441_s14] sm:$0xf] %vm473_vm1, %v1062_v22  ;;  %v769_v33 = vadd.f32 %v765_v24, %v1295_v40 }
 0x2fb   : > { %v781_v27 = vpop.permute.xlu1 %780 }
 0x2fc   : > { %v786_v28 = vadd.f32 %v781_v27, %v768_v25  ;;  %v718_v30 = vpop.permute.xlu0 %717 }
 0x2fd   : > { %v722_v31 = vadd.f32 %v718_v30, %v704_v26 }
 0x2fe   : > { %v1064_v32 = vpack.c.bf16 %v786_v28, %v786_v28 }
 0x2ff   : > { %v1063_v34 = vpack.c.bf16 %v722_v31, %v722_v31 }
 0x300   : > { %796 = vst.msk [vmem:[%s451_s17] sm:$0xf] %vm473_vm1, %v1064_v32  ;;  %v783_v29 = vpop.permute.xlu0 %782 }
 0x301   : > { %733 = vst.msk [vmem:[%s441_s14 + $0x4] sm:$0x3] %vm732_vm3, %v1063_v34  ;;  %v787_v35 = vadd.f32 %v783_v29, %v769_v33 }
 0x303   : > { %v1065_v36 = vpack.c.bf16 %v787_v35, %v787_v35 }
 0x305   : > { %797 = vst.msk [vmem:[%s451_s17 + $0x4] sm:$0x3] %vm732_vm3, %v1065_v36 }
 0x306 PF: > { %s20_s11 = sadd.s32 1, %s1163_s11   ;;  %s1371_s30 = smov %s1159_s10 }
 0x307   : > { %p17_p5 = scmp.ge.s32.totalorder %s20_s11, 4   ;;  %s1372_s10 = smov %s1374_s12 }
 0x309   :  { %19 = sbr.rel (!%p17_p5) target bundleno = 2 (0x2), region = 108 }

// kernel: _lambda_.12
= control target key start
LH: loop header
LB: loop body
LE: loop exit
PB: predicated region body
PF: predicated region fallthrough
CT: control target
= control target key end

     0   :  { %s1410_s12 = smov 0   ;;  %s1412_s13 = smov 0   ;;  %s1560_s0 = inlined_call_operand.vmem [shape: bf16[2,12,32], index: 0, kind: input, shape index: {}]   ;;  %s1561_s1 = inlined_call_operand.vmem [shape: bf16[2,12,32], index: 1, kind: input, shape index: {}]   ;;  %s1562_s2 = inlined_call_operand.vmem [shape: bf16[2,12,32], index: 2, kind: input, shape index: {}]   ;;  %s1563_s3 = inlined_call_operand.vmem [shape: bf16[2,12,32], index: 3, kind: output, shape index: {}]  }
   0x1   :  { %s1414_s14 = smov 0  }
   0x2 LB: > { %s32_s15 = sadd.s32 1, %s1378_s13  ;;  %p1240_p0 = scmp.ge.s32.totalorder %s1382_s14, 1  ;;  %s1382_s14 = sphi %s1414_s14, %s13_s14   ;;  %s1378_s13 = sphi %s1412_s13, %s1565_s13   ;;  %s1374_s12 = sphi %s1410_s12, %s1564_s12  }
   0x3   : > { %p34_p1 = scmp.ge.s32.totalorder %s32_s15, 2  ;;  %p215_p2 = scmp.lt.s32.totalorder %s1382_s14, 3 }
   0x5   : > { %s1567_s15 = smov (%p34_p1, %s32_s15), 0  ;;  %p216_p3 = pnand %p1240_p0, %p215_p2 }
   0x6   : > { %p270_p4 = scmp.lt.s32.totalorder (!%p216_p3), %s1374_s12, 1  ;;  %v1384_v0 = vmov (!%p216_p3), 0.0   ;;  %vm1385_vm0 = vmmov (!%p216_p3), 0   ;;  %vm732_vm1 = vcmask (!%p216_p3), 130048   ;;  %vm322_vm2 = vcmask (!%p216_p3), 7168   ;;  %s1388_s23 = smov (!%p216_p3), 112  }
   0x7   : > { %219 = sbr.rel (%p216_p3) target bundleno = 1390 (0x56e), region = 32  ;;  %1281 = vmatprep.subr.bf16.mxu0 (!%p216_p3), %v1384_v0  ;;  %1283 = vmatprep.mubr.msk.bf16.mxu0 (!%p216_p3), %vm1385_vm0, %v1384_v0  ;;  %v1386_v4 = vmov (!%p216_p3), -1e+30   ;;  %v715_v5 = vlaneseq (!%p216_p3)  ;;  %vm784_vm4 = vcmask (!%p216_p3), 97280   ;;  %vm788_vm6 = vcmask (!%p216_p3), 93184   ;;  %s1389_s27 = smov (!%p216_p3), 16  }
   0x8   : > { %1287 = vmatprep.subr.bf16.mxu1 (!%p216_p3), %v1384_v0  ;;  %1289 = vmatprep.mubr.msk.bf16.mxu1 (!%p216_p3), %vm1385_vm0, %v1384_v0  ;;  %323 = vst.msk [vmem:[#allocation2] sm:$0xff] (!%p216_p3), %vm322_vm2, %v1386_v4  ;;  %326 = vst.msk [vmem:[#allocation2 + $0x10] sm:$0xff] (!%p216_p3), %vm322_vm2, %v1386_v4  ;;  %vm324_vm7 = vcmask (!%p216_p3), 3072   ;;  %v1387_v17 = vmov (!%p216_p3), 0   ;;  %vm854_vm8 = vcmask (!%p216_p3), 1045504   ;;  %vm328_vm9 = vcmask (!%p216_p3), 261120  }
   0x9   : > { %v1451_v6 = vshrl.u32 (!%p216_p3), %v715_v5, 7  ;;  %v1453_v7 = vand.u32 (!%p216_p3), 127, %v715_v5  ;;  %325 = vst.msk [vmem:[#allocation2 + $0x8] sm:$0xf] (!%p216_p3), %vm324_vm7, %v1386_v4  ;;  %327 = vst.msk [vmem:[#allocation2 + $0x18] sm:$0xf] (!%p216_p3), %vm324_vm7, %v1386_v4  ;;  %1335 = vset.pattern.permute.xlu1 (!%p216_p3), %v1387_v17  ;;  %1336 = vset.pattern.permute.xlu0 (!%p216_p3), %v1387_v17 }
   0xa   : > { %329 = vst.msk [vmem:[#allocation3] sm:$0xff] (!%p216_p3), %vm328_vm9, %v1384_v0  ;;  %332 = vst.msk [vmem:[#allocation4] sm:$0xff] (!%p216_p3), %vm328_vm9, %v1384_v0  ;;  %vm330_vm10 = vcmask (!%p216_p3), 257024   ;;  %vm839_vm11 = vcmask (!%p216_p3), 125952   ;;  %vm1015_vm12 = vcmask (!%p216_p3), 261248   ;;  %vm1017_vm13 = vcmask (!%p216_p3), 257152  }
   0xb   : > { %v1456_v8 = vadd.s32 (!%p216_p3), 8, %v1451_v6  ;;  %vm720_vm3 = vcmp.le.s32.totalorder (!%p216_p3), %v1453_v7, %v1451_v6  ;;  %331 = vst.msk [vmem:[#allocation3 + $0x8] sm:$0xf] (!%p216_p3), %vm330_vm10, %v1384_v0  ;;  %333 = vst.msk [vmem:[#allocation4 + $0x8] sm:$0xf] (!%p216_p3), %vm330_vm10, %v1384_v0  ;;  %vm1108_vm14 = vcmask (!%p216_p3), 254976  }
   0xd   : > { %vm721_vm5 = vcmp.le.s32.totalorder (!%p216_p3), %v1453_v7, %v1456_v8 }
   0xe   : > { %s1569_s12 = smov (!%p270_p4, %s1374_s12), 1 }
   0xf   : > { %s1434_s16 = sshll.u32 %s1569_s12, 3  ;;  %v1473_v18 = vld [vmem:[#allocation2] sm:$0xff]  ;;  %v961_v52 = vld [vmem:[#allocation2 + $0x10] sm:$0xff] }
  0x10   : > { %s289_s19 = scalar_lea.vmem %s1561_s1, %s1434_s16  ;;  %s277_s22 = scalar_lea.vmem %s1560_s0, %s1434_s16  ;;  %v1478_v21 = vld [vmem:[#allocation2 + $0x8] sm:$0xf]  ;;  %v962_v54 = vld [vmem:[#allocation2 + $0x18] sm:$0xf] }
  0x11   : > { %v1337_v1 = vld [vmem:[%s289_s19] sm:$0x3f]   ;;  %s303_s26 = scalar_lea.vmem %s1562_s2, %s1434_s16  ;;  %s315_s30 = scalar_lea.vmem %s1563_s3, %s1434_s16 }
  0x12   : > { %v737_v2 = vsel %vm732_vm1, %v1337_v1, 0  ;;  %v1338_v3 = vld [vmem:[%s277_s22] sm:$0x3f]  }
  0x13   : > { %1282 = vmatpush3.bf16.xpose.msra.mxu0 %v737_v2  ;;  %v1339_v26 = vld [vmem:[%s303_s26] sm:$0x3f]  }
  0x14   : > { %1299 = vmatprep.subr.bf16.mxu0 %v1384_v0  ;;  %v856_v27 = vsel %vm854_vm8, %v1339_v26, 0 }
  0x15   : > { %1288 = vmatpush3.bf16.msra.mxu1 %v856_v27 }
  0x16   : > { %1293 = vmatprep.subr.bf16.mxu1 %v1384_v0 }
  0x1a   : > { %1284 = vmatmul.mubr.msk.bf16.vlgmr.msra.gmra.mrb[0].mxu0 %vm732_vm1, %v1338_v3 }
  0x1b   : > { %1301 = vmatprep.mubr.msk.bf16.mxu0 %vm1385_vm0, %v1384_v0 }
  0xed   : > { %v773_v9 = vpop.f32.mrb[0].mxu0 }
  0xee   : > { %v780_v10 = vsel %vm720_vm3, %v773_v9, -1e+30  ;;  %v1285_v11 = vpop.f32.mrb[1].mxu0 }
  0xef   : > { %v776_v12 = vpop.f32.mrb[2].mxu0  ;;  %v785_v13 = vsel %vm784_vm4, %v780_v10, -inf }
  0xf0   : > { %v781_v14 = vsel %vm721_vm5, %v776_v12, -1e+30  ;;  %786 = vmax.xlane.f32.xlu0 %v785_v13  ;;  %v1286_v15 = vpop.f32.mrb[3].mxu0 }
  0xf1   : > { %v789_v16 = vsel %vm788_vm6, %v781_v14, -inf }
  0xf4   : > { %790 = vmax.xlane.f32.xlu0 %v789_v16 }
 0x10a   : > { %909 = vrot.lane.b32.xlu0 %v1337_v1, %s1388_s23 }
 0x17d   : > { %v787_v19 = vpop.xlane.xlu0 %786 }
 0x17e   : > { %v1476_v20 = vmax.f32 %v1473_v18, %v787_v19 }
 0x180   : > { %v794_v22 = vsub.f32 %v1473_v18, %v1476_v20  ;;  %904 = vst.msk [vmem:[#allocation2] sm:$0xff] %vm322_vm2, %v1476_v20  ;;  %802 = vperm.xlu1 %1335, %v1476_v20   ;;  %v816_v20 = vld [vmem:[#allocation3] sm:$0xff] }
 0x181   : > { %v791_v23 = vpop.xlane.xlu0 %790 }
 0x182   : > { %v1486_v24 = vmax.f32 %v1478_v21, %v791_v23  ;;  %v796_v63 = vmul.f32 1.442695, %v794_v22 }
 0x184   : > { %v795_v25 = vsub.f32 %v1478_v21, %v1486_v24  ;;  %906 = vst.msk [vmem:[#allocation2 + $0x8] sm:$0xf] %vm324_vm7, %v1486_v24  ;;  %807 = vperm.xlu1 %1335, %v1486_v24   ;;  %v841_v21 = vld [vmem:[#allocation4] sm:$0xff] }
 0x185   : > { %v910_v34 = vpop.permute.xlu0 %909 }
 0x186   : > { %v915_v37 = vsel %vm732_vm1, %v910_v34, 0  ;;  %v798_v2 = vmul.f32 1.442695, %v795_v25  ;;  %v817_v25 = vld [vmem:[#allocation3 + $0x8] sm:$0xf] }
 0x188   : > { %907 = vrot.lane.b32.xlu1 %v1338_v3, %s1388_s23 }
 0x1ff   : > { %v803_v28 = vpop.permute.xlu1 %802 }
 0x200   : > { %v810_v29 = vsub.f32 %v780_v10, %v803_v28 }
 0x202   : > { %v812_v30 = vmul.f32 1.442695, %v810_v29 }
 0x203   : > { %v808_v31 = vpop.permute.xlu1 %807 }
 0x204   : > { %v811_v32 = vsub.f32 %v781_v14, %v808_v31  ;;  %1340 = vpow2.f32 %v812_v30 }
 0x206   : > { %v814_v33 = vmul.f32 1.442695, %v811_v32 }
 0x207   : > { %v908_v39 = vpop.permute.xlu1 %907 }
 0x208   : > { %1342 = vpow2.f32 %v814_v33 }
 0x20e   : > { %v1341_v35 = vpop.eup %1340 }
 0x20f   : > { %v830_v60 = vsel %vm784_vm4, %v1341_v35, 0.0 }
 0x212   : > { %v1343_v36 = vpop.eup %1342 }
 0x213   : > { %v845_v38 = vpack.c.bf16 %v1343_v36, %v1341_v35  ;;  %v833_v58 = vsel %vm788_vm6, %v1343_v36, 0.0 }
 0x215   : > { %1290 = vmatmul.mubr.msk.bf16.vlgmr.msra.gmra.mrb[0].mxu1 %vm784_vm4, %v845_v38 }
 0x216   : > { %1294 = vmatpush3.bf16.xpose.msra.mxu1 %v915_v37  ;;  %1295 = vmatprep.mubr.msk.bf16.mxu1 %vm1385_vm0, %v1384_v0 }
 0x21d   : > { %1296 = vmatmul.mubr.msk.bf16.vlgmr.msra.gmra.mrb[4].mxu1 %vm732_vm1, %v908_v39 }
 0x2e8   : > { %v1505_v40 = vpop.f32.mrb[0].mxu1 }
 0x2e9   : > { %v1291_v41 = vpop.f32.mrb[1].mxu1 }
 0x2ea   : > { %v1507_v42 = vpop.f32.mrb[2].mxu1 }
 0x2eb   : > { %v1292_v43 = vpop.f32.mrb[3].mxu1 }
 0x2f0   : > { %v951_v44 = vpop.f32.mrb[4].mxu1 }
 0x2f1   : > { %v958_v45 = vsel %vm720_vm3, %v951_v44, -1e+30  ;;  %v1297_v46 = vpop.f32.mrb[5].mxu1 }
 0x2f2   : > { %v954_v47 = vpop.f32.mrb[6].mxu1  ;;  %v963_v48 = vsel %vm784_vm4, %v958_v45, -inf }
 0x2f3   : > { %v959_v49 = vsel %vm721_vm5, %v954_v47, -1e+30  ;;  %964 = vmax.xlane.f32.xlu1 %v963_v48  ;;  %v1298_v50 = vpop.f32.mrb[7].mxu1 }
 0x2f4   : > { %v966_v51 = vsel %vm788_vm6, %v959_v49, -inf }
 0x2f5   : > { %967 = vmax.xlane.f32.xlu0 %v966_v51 }
 0x380   : > { %v965_v53 = vpop.xlane.xlu1 %964 }
 0x381   : > { %v969_v55 = vmax.f32 %v961_v52, %v965_v53 }
 0x382   : > { %v968_v56 = vpop.xlane.xlu0 %967 }
 0x383   : > { %1085 = vst.msk [vmem:[#allocation2 + $0x10] sm:$0xff] %vm322_vm2, %v969_v55  ;;  %v970_v57 = vmax.f32 %v962_v54, %v968_v56  ;;  %979 = vperm.xlu1 %1335, %v969_v55   ;;  %v971_v59 = vsub.f32 %v961_v52, %v969_v55 }
 0x385   : > { %1086 = vst.msk [vmem:[#allocation2 + $0x18] sm:$0xf] %vm324_vm7, %v970_v57  ;;  %984 = vperm.xlu0 %1336, %v970_v57   ;;  %v973_v61 = vmul.f32 1.442695, %v971_v59  ;;  %v972_v62 = vsub.f32 %v962_v54, %v970_v57 }
 0x387   : > { %1024 = vrot.lane.b32.xlu1 %v1339_v26, %s1388_s23  ;;  %1344 = vpow2.f32 %v973_v61  ;;  %v975_v1 = vmul.f32 1.442695, %v972_v62  ;;  %v842_v26 = vld [vmem:[#allocation4 + $0x8] sm:$0xf] }
 0x388   : > { %1346 = vpow2.f32 %v796_v63 }
 0x389   : > { %1348 = vpow2.f32 %v975_v1 }
 0x38a   : > { %1350 = vpow2.f32 %v798_v2 }
 0x391   : > { %v1345_v3 = vpop.eup %1344 }
 0x392   : > { %v1347_v4 = vpop.eup %1346 }
 0x393   : > { %v1349_v5 = vpop.eup %1348 }
 0x394   : > { %v1351_v6 = vpop.eup %1350 }
 0x3a4   : > { %834 = vadd.xlane.f32.xlu0 %v833_v58 }
 0x3ab   : > { %831 = vadd.xlane.f32.xlu1 %v830_v60 }
 0x3ba   : > { %997 = vperm.xlu0 %1336, %v1345_v3  }
 0x3bc   : > { %820 = vperm.xlu1 %1335, %v1347_v4  }
 0x3be   : > { %1002 = vperm.xlu0 %1336, %v1349_v5  }
 0x3c0   : > { %825 = vperm.xlu1 %1335, %v1351_v6  }
 0x402   : > { %v980_v7 = vpop.permute.xlu1 %979 }
 0x403   : > { %v987_v8 = vsub.f32 %v958_v45, %v980_v7 }
 0x404   : > { %v985_v9 = vpop.permute.xlu0 %984 }
 0x405   : > { %v989_v10 = vmul.f32 1.442695, %v987_v8  ;;  %v988_v11 = vsub.f32 %v959_v49, %v985_v9 }
 0x406   : > { %v1025_v12 = vpop.permute.xlu1 %1024 }
 0x407   : > { %1352 = vpow2.f32 %v989_v10  ;;  %v991_v13 = vmul.f32 1.442695, %v988_v11  ;;  %v1030_v14 = vsel %vm854_vm8, %v1025_v12, 0 }
 0x408   : > { %1300 = vmatpush3.bf16.msra.mxu0 %v1030_v14 }
 0x409   : > { %1354 = vpow2.f32 %v991_v13 }
 0x411   : > { %v1353_v0 = vpop.eup %1352 }
 0x412   : > { %v1007_v15 = vsel %vm784_vm4, %v1353_v0, 0.0 }
 0x413   : > { %v1355_v16 = vpop.eup %1354  ;;  %1008 = vadd.xlane.f32.xlu1 %v1007_v15 }
 0x414   : > { %v1010_v17 = vsel %vm788_vm6, %v1355_v16, 0.0  ;;  %v1023_v18 = vpack.c.bf16 %v1355_v16, %v1353_v0 }
 0x415   : > { %1011 = vadd.xlane.f32.xlu0 %v1010_v17 }
 0x416   : > { %1302 = vmatmul.mubr.msk.bf16.vlgmr.msra.gmra.mrb[4].mxu0 %vm784_vm4, %v1023_v18 }
 0x431   : > { %v835_v32 = vpop.xlane.xlu0 %834 }
 0x438   : > { %v832_v19 = vpop.xlane.xlu1 %831 }
 0x439   : > { %v998_v35 = vpop.permute.xlu0 %997 }
 0x43c   : > { %v821_v22 = vpop.permute.xlu1 %820 }
 0x43d   : > { %v828_v23 = vmul.f32 %v821_v22, %v816_v20  ;;  %v843_v24 = vmul.f32 %v841_v21, %v821_v22  ;;  %v1003_v37 = vpop.permute.xlu0 %1002 }
 0x43f   : > { %v836_v27 = vadd.f32 %v832_v19, %v828_v23  ;;  %v899_v28 = vadd.f32 %v1505_v40, %v843_v24 }
 0x440   : > { %v826_v29 = vpop.permute.xlu1 %825 }
 0x441   : > { %838 = vst.msk [vmem:[#allocation3] sm:$0xff] %vm732_vm1, %v836_v27  ;;  %901 = vst.msk [vmem:[#allocation4] sm:$0xff] %vm732_vm1, %v899_v28  ;;  %v829_v30 = vmul.f32 %v826_v29, %v817_v25  ;;  %v844_v31 = vmul.f32 %v842_v26, %v826_v29 }
 0x443   : > { %v837_v33 = vadd.f32 %v835_v32, %v829_v30  ;;  %v900_v34 = vadd.f32 %v1507_v42, %v844_v31 }
 0x445   : > { %840 = vst.msk [vmem:[#allocation3 + $0x8] sm:$0xf] %vm839_vm11, %v837_v33  ;;  %902 = vst.msk [vmem:[#allocation4 + $0x8] sm:$0xf] %vm839_vm11, %v900_v34 }
 0x448   : > { %v993_v36 = vld [vmem:[#allocation3] sm:$0xff]  ;;  %v1019_v49 = vld [vmem:[#allocation4] sm:$0xff] }
 0x449   : > { %v1005_v39 = vmul.f32 %v998_v35, %v993_v36  ;;  %v1021_v53 = vmul.f32 %v1019_v49, %v998_v35 }
 0x44c   : > { %v994_v38 = vld [vmem:[#allocation3 + $0x8] sm:$0xf]  ;;  %v1020_v51 = vld [vmem:[#allocation4 + $0x8] sm:$0xf] }
 0x44d   : > { %v1006_v43 = vmul.f32 %v1003_v37, %v994_v38  ;;  %v1022_v56 = vmul.f32 %v1020_v51, %v1003_v37 }
 0x4a0   : > { %v1009_v40 = vpop.xlane.xlu1 %1008 }
 0x4a1   : > { %v1013_v41 = vadd.f32 %v1009_v40, %v1005_v39 }
 0x4a2   : > { %v1012_v44 = vpop.xlane.xlu0 %1011 }
 0x4a3   : > { %1016 = vst.msk [vmem:[#allocation3] sm:$0xff] %vm1015_vm12, %v1013_v41  ;;  %v1014_v45 = vadd.f32 %v1012_v44, %v1006_v43 }
 0x4a5   : > { %1018 = vst.msk [vmem:[#allocation3 + $0x8] sm:$0xf] %vm1017_vm13, %v1014_v45 }
 0x4aa   : > { %v1092_v50 = vld [vmem:[#allocation3] sm:$0xff] }
 0x4ab   : > { %1356 = vrcp.f32 %v1092_v50 }
 0x4ac   : > { %v1093_v52 = vld [vmem:[#allocation3 + $0x8] sm:$0xf] }
 0x4ad   : > { %1358 = vrcp.f32 %v1093_v52 }
 0x4b5   : > { %v1357_v59 = vpop.eup %1356 }
 0x4b7   : > { %v1359_v62 = vpop.eup %1358 }
 0x4e9   : > { %v1066_v46 = vpop.f32.mrb[4].mxu0 }
 0x4ea   : > { %1075 = vrot.lane.b32.xlu1 %v1066_v46, %s1389_s27  ;;  %v1303_v42 = vpop.f32.mrb[5].mxu0 }
 0x4eb   : > { %v1069_v47 = vpop.f32.mrb[6].mxu0 }
 0x4ec   : > { %1077 = vrot.lane.b32.xlu0 %v1069_v47, %s1389_s27  ;;  %v1304_v48 = vpop.f32.mrb[7].mxu0 }
 0x55c   : > { %v1076_v54 = vpop.permute.xlu1 %1075 }
 0x55d   : > { %v1081_v55 = vadd.f32 %v1076_v54, %v1021_v53 }
 0x55e   : > { %v1078_v57 = vpop.permute.xlu0 %1077 }
 0x55f   : > { %1083 = vst.msk [vmem:[#allocation4] sm:$0xff] %vm1015_vm12, %v1081_v55  ;;  %v1082_v58 = vadd.f32 %v1078_v57, %v1022_v56 }
 0x561   : > { %1084 = vst.msk [vmem:[#allocation4 + $0x8] sm:$0xf] %vm1017_vm13, %v1082_v58 }
 0x566   : > { %v1090_v60 = vld [vmem:[#allocation4] sm:$0xff] }
 0x567   : > { %v1096_v61 = vmul.f32 %v1357_v59, %v1090_v60 }
 0x568   : > { %v1091_v63 = vld [vmem:[#allocation4 + $0x8] sm:$0xf] }
 0x569   : > { %v1271_v1 = vpack.c.bf16 %v1096_v61, %v1096_v61  ;;  %v1097_v2 = vmul.f32 %v1359_v62, %v1091_v63 }
 0x56b   : > { %1107 = vst.msk [vmem:[%s315_s30] sm:$0xf] %vm330_vm10, %v1271_v1  ;;  %v1272_v3 = vpack.c.bf16 %v1097_v2, %v1097_v2 }
 0x56d   : > { %1109 = vst.msk [vmem:[%s315_s30 + $0x4] sm:$0x3] %vm1108_vm14, %v1272_v3 }
 0x56e PF: > { %s13_s14 = sadd.s32 1, %s1382_s14   ;;  %s1564_s12 = smov %s1378_s13 }
 0x56f   : > { %p10_p5 = scmp.ge.s32.totalorder %s13_s14, 4   ;;  %s1565_s13 = smov %s1567_s15 }
 0x571   :  { %12 = sbr.rel (!%p10_p5) target bundleno = 2 (0x2), region = 86 }

// kernel: _lambda_.14
= control target key start
LH: loop header
LB: loop body
LE: loop exit
PB: predicated region body
PF: predicated region fallthrough
CT: control target
= control target key end

     0   :  { %vm32_vm0 = vcmask 261120   ;;  %vm76_vm1 = vcmask 257024   ;;  %v507_v45 = vmov 0.0   ;;  %s629_s0 = inlined_call_operand.vmem [shape: f32[24,32], index: 0, kind: input, shape index: {}]   ;;  %s630_s2 = inlined_call_operand.vmem [shape: bf16[32,128], index: 2, kind: input, shape index: {}]   ;;  %s631_s3 = inlined_call_operand.vmem [shape: bf16[32,128], index: 3, kind: input, shape index: {}]   ;;  %s632_s1 = inlined_call_operand.vmem [shape: f32[1,32], index: 1, kind: input, shape index: {}]   ;;  %s633_s4 = inlined_call_operand.vmem [shape: bf16[128,32], index: 4, kind: input, shape index: {}]   ;;  %s634_s5 = inlined_call_operand.vmem [shape: f32[24,32], index: 5, kind: output, shape index: {}]  }
   0x1   :  { %v541_v0 = vld [vmem:[%s629_s0] sm:$0xff]  ;;  %v546_v1 = vld [vmem:[%s629_s0 + $0x8] sm:$0xff]  ;;  %v551_v2 = vld [vmem:[%s629_s0 + $0x10] sm:$0xff]  ;;  %82 = vst.msk [vmem:[#allocation3 + $0x10] sm:$0xff] %vm32_vm0, %v507_v45 }
   0x2   :  { %v29_v3 = vmul.f32 %v541_v0, %v541_v0  ;;  %v30_v4 = vmul.f32 %v546_v1, %v546_v1  ;;  %v31_v5 = vmul.f32 %v551_v2, %v551_v2  ;;  %v481_v9 = vld [vmem:[%s630_s2] sm:$0xff]   ;;  %v482_v10 = vld [vmem:[%s630_s2 + $0x8] sm:$0xff]   ;;  %v489_v39 = vld [vmem:[%s633_s4 + $0x10] sm:$0xff]   ;;  %80 = vst.msk [vmem:[#allocation3] sm:$0xff] %vm32_vm0, %v507_v45 }
   0x3   :  { %444 = vmatprep.subr.bf16.mxu1 %v481_v9  ;;  %v484_v11 = vld [vmem:[%s631_s3] sm:$0xff]   ;;  %v486_v36 = vld [vmem:[%s631_s3 + $0x8] sm:$0xff]   ;;  %v490_v40 = vld [vmem:[%s633_s4 + $0x18] sm:$0xff]   ;;  %81 = vst.msk [vmem:[#allocation3 + $0x8] sm:$0xff] %vm32_vm0, %v507_v45 }
   0x4   :  { %v33_v6 = vsel %vm32_vm0, %v29_v3, 0.0  ;;  %v39_v7 = vsel %vm32_vm0, %v31_v5, 0.0  ;;  %v36_v8 = vsel %vm32_vm0, %v30_v4, 0.0  ;;  %445 = vmatpush3.bf16.msra.mxu1 %v481_v9  ;;  %v401_v21 = vld [vmem:[%s632_s1] ss:$0 sm:$0xff]  ;;  %v488_v38 = vld [vmem:[%s633_s4 + $0x8] sm:$0xff]  }
   0x5   :  { %34 = vadd.xlane.f32.xlu0 %v33_v6  ;;  %40 = vadd.xlane.f32.xlu1 %v39_v7  ;;  %v487_v37 = vld [vmem:[%s633_s4] sm:$0xff]   ;;  %v492_v42 = vld [vmem:[%s633_s4 + $0x28] sm:$0xff]   ;;  %v493_v43 = vld [vmem:[%s633_s4 + $0x30] sm:$0xff]  }
   0x6   :  { %446 = vmatprep.subr.bf16.mxu1 %v482_v10  ;;  %460 = vmatprep.subr.bf16.mxu0 %v487_v37  ;;  %v491_v41 = vld [vmem:[%s633_s4 + $0x20] sm:$0xff]   ;;  %v494_v44 = vld [vmem:[%s633_s4 + $0x38] sm:$0xff]  }
   0x7   :  { %461 = vmatpush3.bf16.msra.mxu0 %v487_v37 }
   0x8   :  { %447 = vmatpush3.bf16.msra.mxu1 %v482_v10  ;;  %462 = vmatprep.subr.bf16.mxu0 %v488_v38 }
   0x9   :  { %37 = vadd.xlane.f32.xlu0 %v36_v8  ;;  %452 = vmatprep.subr.bf16.mxu1 %v484_v11 }
   0xb   :  { %463 = vmatpush3.bf16.msra.mxu0 %v488_v38 }
   0xc   :  { %464 = vmatprep.subr.bf16.mxu0 %v489_v39 }
   0xf   :  { %465 = vmatpush3.bf16.msra.mxu0 %v489_v39 }
  0x10   :  { %466 = vmatprep.subr.bf16.mxu0 %v490_v40 }
  0x13   :  { %467 = vmatpush3.bf16.msra.mxu0 %v490_v40 }
  0x14   :  { %468 = vmatprep.subr.bf16.mxu0 %v491_v41 }
  0x17   :  { %469 = vmatpush3.bf16.msra.mxu0 %v491_v41 }
  0x18   :  { %470 = vmatprep.subr.bf16.mxu0 %v492_v42 }
  0x1b   :  { %471 = vmatpush3.bf16.msra.mxu0 %v492_v42 }
  0x1c   :  { %472 = vmatprep.subr.bf16.mxu0 %v493_v43 }
  0x1f   :  { %473 = vmatpush3.bf16.msra.mxu0 %v493_v43 }
  0x20   :  { %474 = vmatprep.subr.bf16.mxu0 %v494_v44 }
  0x23   :  { %475 = vmatpush3.bf16.msra.mxu0 %v494_v44 }
  0x92   :  { %v35_v12 = vpop.xlane.xlu0 %34  ;;  %v41_v13 = vpop.xlane.xlu1 %40 }
  0x93   :  { %v42_v14 = vmax.f32 %v35_v12, 1e-24  ;;  %v44_v15 = vmax.f32 %v41_v13, 1e-24 }
  0x95   :  { %495 = vrsqrt.f32 %v42_v14 }
  0x96   :  { %v38_v16 = vpop.xlane.xlu0 %37  ;;  %497 = vrsqrt.f32 %v44_v15 }
  0x97   :  { %v43_v17 = vmax.f32 %v38_v16, 1e-24 }
  0x99   :  { %499 = vrsqrt.f32 %v43_v17 }
  0x9f   :  { %v496_v18 = vpop.eup %495 }
  0xa0   :  { %v498_v19 = vpop.eup %497  ;;  %v48_v20 = vmul.f32 5.656854, %v496_v18 }
  0xa1   :  { %v50_v22 = vmul.f32 5.656854, %v498_v19 }
  0xa2   :  { %v51_v23 = vmul.f32 %v48_v20, %v541_v0 }
  0xa3   :  { %v500_v24 = vpop.eup %499  ;;  %v53_v25 = vmul.f32 %v551_v2, %v50_v22 }
  0xa4   :  { %v60_v26 = vmul.f32 %v401_v21, %v51_v23  ;;  %v49_v27 = vmul.f32 5.656854, %v500_v24 }
  0xa5   :  { %v62_v28 = vmul.f32 %v401_v21, %v53_v25  ;;  %v263_v25 = vld [vmem:[#allocation3 + $0x10] sm:$0xff] }
  0xa6   :  { %v423_v29 = vpack.c.bf16 %v60_v26, %v60_v26  ;;  %v52_v30 = vmul.f32 %v546_v1, %v49_v27  ;;  %v261_v26 = vld [vmem:[#allocation3] sm:$0xff] }
  0xa7   :  { %v425_v31 = vpack.c.bf16 %v62_v28, %v62_v28 }
  0xa8   :  { %77 = vst.msk [vmem:[#allocation2] sm:$0xf] %vm76_vm1, %v423_v29  ;;  %v61_v32 = vmul.f32 %v401_v21, %v52_v30  ;;  %v262_v30 = vld [vmem:[#allocation3 + $0x8] sm:$0xff] }
  0xa9   :  { %79 = vst.msk [vmem:[#allocation2 + $0x8] sm:$0xf] %vm76_vm1, %v425_v31 }
  0xaa   :  { %v424_v33 = vpack.c.bf16 %v61_v32, %v61_v32 }
  0xac   :  { %78 = vst.msk [vmem:[#allocation2 + $0x4] sm:$0xf] %vm76_vm1, %v424_v33 }
  0xb0   :  { %v485_v34 = vld [vmem:[#allocation2 + $0x8] ss:$0 sps:$4 sm:$0xff]  }
  0xb3   :  { %v483_v35 = vld [vmem:[#allocation2] sm:$0xff]  }
  0xb4   :  { %448 = vmatprep.mubr.msk.bf16.mxu1 %vm32_vm0, %v483_v35 }
  0xb5   :  { %449 = vmatmul.mubr.msk.bf16.vlgmr.msra.gmra.mrb[0].mxu1 %vm32_vm0, %v485_v34 }
  0xb6   :  { %453 = vmatpush3.bf16.msra.mxu1 %v484_v11  ;;  %456 = vmatprep.mubr.msk.bf16.mxu1 %vm32_vm0, %v483_v35 }
  0xb7   :  { %454 = vmatprep.subr.bf16.mxu1 %v486_v36 }
  0xba   :  { %455 = vmatpush3.bf16.msra.mxu1 %v486_v36 }
  0xbd   :  { %457 = vmatmul.mubr.msk.bf16.vlgmr.msra.gmra.mrb[4].mxu1 %vm32_vm0, %v485_v34 }
 0x188   :  { %v450_v46 = vpop.f32.mrb[0].mxu1 }
 0x189   :  { %v151_v47 = vpop.f32.mrb[1].mxu1 }
 0x18a   :  { %v451_v48 = vpop.f32.mrb[2].mxu1 }
 0x18b   :  { %v154_v49 = vpop.f32.mrb[3].mxu1 }
 0x190   :  { %v458_v50 = vpop.f32.mrb[4].mxu1 }
 0x191   :  { %v231_v51 = vmul.f32 %v458_v50, %v458_v50  ;;  %v215_v52 = vpop.f32.mrb[5].mxu1 }
 0x192   :  { %v229_v53 = vmul.f32 %v215_v52, %v215_v52  ;;  %v459_v54 = vpop.f32.mrb[6].mxu1 }
 0x193   :  { %v234_v55 = vmul.f32 %v458_v50, %v231_v51  ;;  %v218_v56 = vpop.f32.mrb[7].mxu1 }
 0x194   :  { %v232_v57 = vmul.f32 %v229_v53, %v215_v52  ;;  %v230_v58 = vmul.f32 %v218_v56, %v218_v56 }
 0x195   :  { %v237_v59 = vmul.f32 0.044715, %v234_v55 }
 0x196   :  { %v235_v60 = vmul.f32 0.044715, %v232_v57  ;;  %v233_v61 = vmul.f32 %v230_v58, %v218_v56 }
 0x197   :  { %v240_v62 = vadd.f32 %v458_v50, %v237_v59 }
 0x198   :  { %v238_v63 = vadd.f32 %v235_v60, %v215_v52  ;;  %v236_v3 = vmul.f32 0.044715, %v233_v61 }
 0x199   :  { %v243_v4 = vmul.f32 0.7978846, %v240_v62 }
 0x19a   :  { %v241_v5 = vmul.f32 0.7978846, %v238_v63  ;;  %v239_v6 = vadd.f32 %v236_v3, %v218_v56 }
 0x19b   :  { %501 = vtanh.f32 %v243_v4 }
 0x19c   :  { %503 = vtanh.f32 %v241_v5  ;;  %v242_v7 = vmul.f32 0.7978846, %v239_v6 }
 0x19e   :  { %505 = vtanh.f32 %v242_v7 }
 0x1a5   :  { %v502_v8 = vpop.eup %501 }
 0x1a6   :  { %v504_v9 = vpop.eup %503  ;;  %v249_v10 = vadd.f32 1.0, %v502_v8 }
 0x1a7   :  { %v247_v11 = vadd.f32 1.0, %v504_v9 }
 0x1a8   :  { %v506_v12 = vpop.eup %505  ;;  %v252_v13 = vmul.f32 0.5, %v249_v10 }
 0x1a9   :  { %v248_v14 = vadd.f32 1.0, %v506_v12  ;;  %v250_v15 = vmul.f32 0.5, %v247_v11 }
 0x1aa   :  { %v255_v16 = vmul.f32 %v458_v50, %v252_v13 }
 0x1ab   :  { %v251_v17 = vmul.f32 0.5, %v248_v14  ;;  %v253_v18 = vmul.f32 %v250_v15, %v215_v52 }
 0x1ac   :  { %v258_v19 = vmul.f32 %v450_v46, %v255_v16 }
 0x1ad   :  { %v254_v20 = vmul.f32 %v251_v17, %v218_v56  ;;  %v256_v21 = vmul.f32 %v253_v18, %v151_v47 }
 0x1ae   :  { %v260_v24 = vpack.c.bf16 %v258_v19, %v258_v19 }
 0x1af   :  { %v257_v22 = vmul.f32 %v254_v20, %v154_v49 }
 0x1b1   :  { %v259_v23 = vpack.c.bf16 %v257_v22, %v256_v21 }
 0x1b3   :  { %476 = vmatprep.mubr.bf16.mxu0 %v259_v23 }
 0x1b4   :  { %477 = vmatmul.mubr.bf16.vlgmr.msra.gmra.mrb[0].mxu0 %v260_v24 }
 0x287   :  { %v478_v27 = vpop.f32.mrb[0].mxu0 }
 0x288   :  { %v378_v28 = vadd.f32 %v478_v27, %v263_v25  ;;  %v362_v29 = vpop.f32.mrb[1].mxu0 }
 0x289   :  { %v376_v31 = vadd.f32 %v362_v29, %v261_v26  ;;  %v479_v32 = vpop.f32.mrb[2].mxu0 }
 0x28a   :  { %381 = vst.msk [vmem:[#allocation3 + $0x10] sm:$0xff] %vm32_vm0, %v378_v28  ;;  %v365_v33 = vpop.f32.mrb[3].mxu0 }
 0x28b   :  { %379 = vst.msk [vmem:[#allocation3] sm:$0xff] %vm32_vm0, %v376_v31  ;;  %v377_v34 = vadd.f32 %v365_v33, %v262_v30 }
 0x28d   :  { %380 = vst.msk [vmem:[#allocation3 + $0x8] sm:$0xff] %vm32_vm0, %v377_v34 }
 0x291   :  { %v387_v35 = vld [vmem:[#allocation3 + $0x10] sm:$0xff] }
 0x292   :  { %v393_v36 = vadd.f32 %v551_v2, %v387_v35  ;;  %v385_v37 = vld [vmem:[#allocation3] sm:$0xff] }
 0x293   :  { %v391_v38 = vadd.f32 %v385_v37, %v541_v0 }
 0x294   :  { %396 = vst.msk [vmem:[%s634_s5 + $0x10] sm:$0xff] %vm32_vm0, %v393_v36  ;;  %v386_v39 = vld [vmem:[#allocation3 + $0x8] sm:$0xff] }
 0x295   :  { %394 = vst.msk [vmem:[%s634_s5] sm:$0xff] %vm32_vm0, %v391_v38  ;;  %v392_v40 = vadd.f32 %v546_v1, %v386_v39 }
 0x297   :  { %395 = vst.msk [vmem:[%s634_s5 + $0x8] sm:$0xff] %vm32_vm0, %v392_v40 }

// kernel: _lambda_.19
= control target key start
LH: loop header
LB: loop body
LE: loop exit
PB: predicated region body
PF: predicated region fallthrough
CT: control target
= control target key end

     0   :  { %vm34_vm0 = vcmask 261120   ;;  %s404_s0 = inlined_call_operand.vmem [shape: f32[16,32], index: 0, kind: input, shape index: {}]   ;;  %s405_s1 = inlined_call_operand.vmem [shape: f32[1,32], index: 1, kind: input, shape index: {}]   ;;  %s406_s2 = inlined_call_operand.vmem [shape: bf16[32,16], index: 2, kind: input, shape index: {}]   ;;  %s407_s3 = inlined_call_operand.vmem [shape: f32[1,16], index: 3, kind: input, shape index: {}]   ;;  %s408_s4 = inlined_call_operand.vmem [shape: bf16[16,128], index: 4, kind: input, shape index: {}]   ;;  %s409_s5 = inlined_call_operand.vmem [shape: f32[1,128], index: 5, kind: input, shape index: {}]   ;;  %s410_s6 = inlined_call_operand.hbm [shape: f32[16,128], index: 6, kind: output, shape index: {}]  }
   0x1   :  { %v29_v0 = vld [vmem:[%s404_s0] sm:$0xff]  ;;  %v30_v1 = vld [vmem:[%s404_s0 + $0x8] sm:$0xff] }
   0x2   :  { %v32_v2 = vmul.f32 %v29_v0, %v29_v0  ;;  %v33_v3 = vmul.f32 %v30_v1, %v30_v1 }
   0x4   :  { %v35_v4 = vsel %vm34_vm0, %v32_v2, 0.0 }
   0x5   :  { %11 = vsyncpa [#allocation5], 0  ;;  %36 = vadd.xlane.f32.xlu0 %v35_v4  ;;  %v38_v5 = vsel %vm34_vm0, %v33_v3, 0.0  ;;  %v289_v6 = vld [vmem:[%s406_s2] sm:$0xff]   ;;  %v324_v7 = vmov 0.0   ;;  %v290_v8 = vld [vmem:[%s406_s2 + $0x8] sm:$0xff]  }
   0x6   :  { %267 = vmatprep.subr.bf16.mxu0 %v324_v7  ;;  %275 = vmatprep.subr.bf16.mxu1 %v324_v7  ;;  %vm325_vm1 = vmmov 0   ;;  %v254_v18 = vld [vmem:[%s405_s1] ss:$0 sm:$0xff]  ;;  %vm126_vm2 = vcmask 130048   ;;  %v326_v37 = vmov 0   ;;  %vm136_vm3 = vcmask 7168  }
   0x7   :  { %268 = vmatpush3.bf16.msra.mxu0 %v289_v6  ;;  %271 = vmatprep.mubr.msk.bf16.mxu0 %vm325_vm1, %v324_v7  ;;  %v291_v23 = vld [vmem:[%s408_s4] sm:$0xff]   ;;  %s327_s4 = smov [#allocation4]  }
   0x8   :  { %269 = vmatprep.subr.bf16.mxu0 %v324_v7  ;;  %277 = vmatprep.mubr.msk.bf16.mxu1 %vm325_vm1, %v324_v7  ;;  %v255_v24 = vld [vmem:[%s407_s3] ss:$0 sm:$0xff] }
   0x9   :  { %39 = vadd.xlane.f32.xlu0 %v38_v5  ;;  %276 = vmatpush3.bf16.msra.mxu1 %v291_v23  ;;  %v261_v47 = vld [vmem:[%s409_s5] ss:$0 sm:$0xff]  ;;  %s243_s5 = sshll.u32 %s327_s4, 4  ;;  %s244_s5 = int_to_ptr.vmem [resolvable:$true] %s243_s5 }
   0xa   :  { %287 = vset.pattern.permute.xlu0 %v326_v37  ;;  %288 = vset.pattern.permute.xlu1 %v326_v37  ;;  %s300_s9 = scalar_lea.vmem %s244_s5, 256  ;;  %p305_p1 = scmp.lt.s32.totalorder %s244_s5, %s244_s5 }
   0xb   :  { %270 = vmatpush3.bf16.msra.mxu0 %v290_v8  ;;  %p301_p0 = scmp.ne.s32.totalorder %s244_s5, %s300_s9  ;;  %p306_p2 = scmp.lt.s32.totalorder %s300_s9, %s300_s9 }
   0xd   :  { %p307_p3 = por %p306_p2, %p305_p1 }
   0xf   :  { %p308_p4 = pnand %p307_p3, %p301_p0 }
  0x92   :  { %v37_v9 = vpop.xlane.xlu0 %36 }
  0x93   :  { %v41_v10 = vmax.f32 %v37_v9, 1e-24 }
  0x95   :  { %292 = vrsqrt.f32 %v41_v10 }
  0x96   :  { %v40_v11 = vpop.xlane.xlu0 %39 }
  0x97   :  { %v42_v12 = vmax.f32 %v40_v11, 1e-24 }
  0x99   :  { %294 = vrsqrt.f32 %v42_v12 }
  0x9f   :  { %v293_v13 = vpop.eup %292 }
  0xa0   :  { %v45_v14 = vmul.f32 5.656854, %v293_v13 }
  0xa2   :  { %v47_v16 = vmul.f32 %v45_v14, %v29_v0 }
  0xa3   :  { %v295_v15 = vpop.eup %294 }
  0xa4   :  { %v46_v17 = vmul.f32 5.656854, %v295_v15  ;;  %v55_v20 = vmul.f32 %v254_v18, %v47_v16 }
  0xa6   :  { %v48_v19 = vmul.f32 %v46_v17, %v30_v1 }
  0xa8   :  { %v56_v21 = vmul.f32 %v254_v18, %v48_v19 }
  0xaa   :  { %v57_v22 = vpack.c.bf16 %v56_v21, %v55_v20 }
  0xac   :  { %272 = vmatmul.mubr.msk.bf16.vlgmr.msra.gmra.mrb[0].mxu0 %vm34_vm0, %v57_v22 }
 0x17f   :  { %v118_v25 = vpop.f32.mrb[0].mxu0 }
 0x180   :  { %v119_v26 = vadd.f32 %v255_v24, %v118_v25  ;;  %v273_v27 = vpop.f32.mrb[1].mxu0 }
 0x181   :  { %v121_v28 = vpop.f32.mrb[2].mxu0 }
 0x182   :  { %v122_v29 = vadd.f32 %v255_v24, %v121_v28  ;;  %v274_v30 = vpop.f32.mrb[3].mxu0  ;;  %v128_v31 = vmul.f32 %v119_v26, %v119_v26 }
 0x184   :  { %v125_v32 = vpack.c.bf16 %v122_v29, %v119_v26  ;;  %v130_v33 = vsel %vm126_vm2, %v128_v31, 0.0  ;;  %v129_v34 = vmul.f32 %v122_v29, %v122_v29 }
 0x185   :  { %131 = vadd.xlane.f32.xlu1 %v130_v33 }
 0x186   :  { %127 = vst.msk [vmem:[#allocation2] sm:$0xff] %vm126_vm2, %v125_v32  ;;  %v133_v35 = vsel %vm126_vm2, %v129_v34, 0.0 }
 0x189   :  { %134 = vadd.xlane.f32.xlu1 %v133_v35 }
 0x18d   :  { %v139_v36 = vld [vmem:[#allocation2] sm:$0xff] }
 0x18e   :  { %278 = vmatmul.mubr.msk.bf16.vlgmr.msra.gmra.mrb[0].mxu1 %vm126_vm2, %v139_v36 }
 0x212   :  { %v132_v38 = vpop.xlane.xlu1 %131 }
 0x213   :  { %137 = vst.msk [vmem:[#allocation3] sm:$0xff] %vm136_vm3, %v132_v38 }
 0x216   :  { %v135_v39 = vpop.xlane.xlu1 %134 }
 0x217   :  { %138 = vst.msk [vmem:[#allocation3 + $0x8] sm:$0xff] %vm136_vm3, %v135_v39 }
 0x21a   :  { %v193_v40 = vld [vmem:[#allocation3] sm:$0xff] }
 0x21b   :  { %199 = vperm.xlu0 %287, %v193_v40  }
 0x21e   :  { %v194_v41 = vld [vmem:[#allocation3 + $0x8] sm:$0xff] }
 0x21f   :  { %204 = vperm.xlu1 %288, %v194_v41  }
 0x261   :  { %v186_v42 = vpop.f32.mrb[0].mxu1 }
 0x262   :  { %v279_v43 = vpop.f32.mrb[1].mxu1  ;;  %v195_v46 = vmul.f32 2.0, %v186_v42 }
 0x263   :  { %v189_v44 = vpop.f32.mrb[2].mxu1 }
 0x264   :  { %v280_v45 = vpop.f32.mrb[3].mxu1  ;;  %v196_v50 = vmul.f32 2.0, %v189_v44 }
 0x29a   :  { %v200_v48 = vpop.permute.xlu0 %199 }
 0x29b   :  { %v207_v49 = vsub.f32 %v200_v48, %v195_v46 }
 0x29d   :  { %v216_v51 = vadd.f32 %v261_v47, %v207_v49 }
 0x29e   :  { %v205_v52 = vpop.permute.xlu1 %204 }
 0x29f   :  { %v218_v53 = vmax.f32 %v216_v51, 0.0  ;;  %v208_v54 = vsub.f32 %v205_v52, %v196_v50 }
 0x2a1   :  { %296 = vrsqrt.f32 %v218_v53  ;;  %v217_v55 = vadd.f32 %v261_v47, %v208_v54  ;;  %vm222_vm4 = vcmp.eq.f32.partialorder %v218_v53, inf  ;;  %v225_v59 = vand.u32 2147483648, %v218_v53 }
 0x2a2   :  { %vm224_vm5 = vcmp.eq.f32.partialorder %v218_v53, 0.0 }
 0x2a3   :  { %v219_v56 = vmax.f32 %v217_v55, 0.0 }
 0x2a5   :  { %298 = vrsqrt.f32 %v219_v56  ;;  %vm229_vm6 = vcmp.eq.f32.partialorder %v219_v56, inf  ;;  %v232_v1 = vand.u32 2147483648, %v219_v56  ;;  %vm231_vm7 = vcmp.eq.f32.partialorder %v219_v56, 0.0 }
 0x2ab   :  { %v297_v57 = vpop.eup %296 }
 0x2ac   :  { %v221_v58 = vmul.f32 %v297_v57, %v218_v53 }
 0x2ae   :  { %v223_v60 = vsel %vm222_vm4, %v218_v53, %v221_v58 }
 0x2af   :  { %v299_v61 = vpop.eup %298  ;;  %v226_v62 = vsel %vm224_vm5, %v225_v59, %v223_v60 }
 0x2b0   :  { %v228_v63 = vmul.f32 %v299_v61, %v219_v56  ;;  %v234_v0 = vsub.f32 0.0, %v226_v62 }
 0x2b2   :  { %v230_v2 = vsel %vm229_vm6, %v219_v56, %v228_v63  ;;  %236 = vst [vmem:[#allocation4] sm:$0xff] %v234_v0 }
 0x2b3   :  { %v233_v3 = vsel %vm231_vm7, %v232_v1, %v230_v2 }
 0x2b4   :  { %v235_v4 = vsub.f32 0.0, %v233_v3 }
 0x2b6   :  { %237 = vst [vmem:[#allocation4 + $0x8] sm:$0xff] %v235_v4 }
 0x2b7   :  { %311 = shalt.err (!%p308_p4)
}
 0x2b8   :  { %s312_s12 = scalar_lea.hbm %s410_s6, 256 }
 0x2b9   :  { %p313_p5 = scmp.ne.s32.totalorder %s410_s6, %s312_s12  ;;  %p316_p6 = scmp.lt.u32.totalorder %s312_s12, %s410_s6 }
 0x2bb   :  { %p318_p7 = pnand %p316_p6, %p313_p5 }
 0x2bd   :  { %321 = shalt.err (!%p318_p7)
}
 0x2be   :  { %s328_s17 = smov 128   ;;  %s329_s18 = smov 8  }
 0x2bf   :  { %249 = dma.vmem_to_hbm [thread:$0]  %s244_s5, 256, %s410_s6, [#allocation5], %s328_s17, %s328_s17, %s329_s18  }
 0x2c0   :  { %322 = dma.done.wait [#allocation5], 256  }
 0x2c1   :  { %323 = vsyncadd [#allocation5], 4294967040 }
 0x2c2   :  { %253 = vsyncpa [#allocation5], 1 }

</bundles_post_ra>
